<compile_context>
chip_gen: v5e
topology: v5e:2x2
jax: 0.10.0
libtpu: 0.0.40
codegen_flags: <defaults>
</compile_context>

<pallas_src>
import functools
import math

import jax
import jax.numpy as jnp
import numpy as np
from jax.experimental import pallas as pl
from jax.experimental.pallas import tpu as pltpu

BN_EPS = 1e-5
_HIGHEST = jax.lax.Precision.HIGHEST


# -----------------------------------------------------------------------------------------
# Kernel 1:  out = x + ReLU(BatchNorm1d_train(Conv1d(x)))          (one MLPBlock + residual)
# grid = (2, N):  phase 0 accumulates full-batch BN statistics, phase 1 normalizes + writes.
# -----------------------------------------------------------------------------------------
def _mlp_res_kernel(x_ref, w_ref, p_ref, o_ref, sum_ref, sq_ref, *,
                    kernel_size, stride, l_out, inv_count, add_residual):
    phase = pl.program_id(0)
    b = pl.program_id(1)

    @pl.when(jnp.logical_and(phase == 0, b == 0))
    def _init_stats():
        sum_ref[...] = jnp.zeros_like(sum_ref)
        sq_ref[...] = jnp.zeros_like(sq_ref)

    bias = p_ref[:, 0:1]                                     # (C_out, 1)

    # Conv1d as per-tap matmuls on VMEM tiles (no HBM im2col).
    # NOTE: f32 operands for exact parity with the f32 reference; cast to bf16 in production.
    if kernel_size == 1 and stride == 1:
        x_in = x_ref[0]                                      # (C_in, L), reused by residual
        y = jnp.dot(w_ref[0], x_in, preferred_element_type=jnp.float32)
    else:
        x_in = None
        y = None
        for t in range(kernel_size):                         # static, small unrolled loop
            if stride == 1:
                x_t = x_ref[0, :, pl.ds(t, l_out)]
            else:
                x_t = x_ref[0, :, pl.ds(t, l_out, stride)]
            part = jnp.dot(w_ref[t], x_t, preferred_element_type=jnp.float32)
            y = part if y is None else y + part
    y = y + bias                                             # (C_out, L_out)

    @pl.when(phase == 0)
    def _accumulate_stats():
        sum_ref[...] += jnp.sum(y, axis=1, keepdims=True)
        sq_ref[...] += jnp.sum(y * y, axis=1, keepdims=True)

    @pl.when(phase == 1)
    def _normalize_and_write():
        mean = sum_ref[...] * inv_count                      # (C_out, 1)
        var = jnp.maximum(sq_ref[...] * inv_count - mean * mean, 0.0)
        gamma = p_ref[:, 1:2]
        beta = p_ref[:, 2:3]
        scale = gamma * jax.lax.rsqrt(var + BN_EPS)
        shift = beta - mean * scale
        out = jnp.maximum(y * scale + shift, 0.0)            # ReLU(BN(conv))
        if add_residual:
            out = (x_in if x_in is not None else x_ref[0]) + out
        o_ref[0] = out


def mlp_block_res(x, conv_w, conv_b, bn_gamma, bn_beta, *, stride=1, add_residual=True):
    """(x +) ReLU(BatchNorm1d_train(Conv1d(x)));  x: (N, C_in, L) float32, NCL layout."""
    # TODO(synk): BatchNorm1d running_mean/running_var buffer updates (a training-time side
    # effect, not part of the returned tensor) are not produced.
    n, c_in, length = x.shape
    c_out, c_in_w, ks = conv_w.shape
    assert c_in_w == c_in
    l_out = (length - ks) // stride + 1
    if add_residual:
        # TransformerBlock's `x = x + self.fcK(x)` only type-checks for shape-preserving
        # MLPBlocks, i.e. kernel_size == 1 and stride == 1.
        assert (c_out, l_out) == (c_in, length), \
            "residual add requires a shape-preserving MLPBlock (kernel_size=1, stride=1)"

    w = jnp.transpose(conv_w, (2, 0, 1)).astype(jnp.float32)          # (ks, C_out, C_in)
    packed = jnp.stack([conv_b, bn_gamma, bn_beta], axis=1).astype(jnp.float32)  # (C_out, 3)

    kernel = functools.partial(
        _mlp_res_kernel, kernel_size=ks, stride=stride, l_out=l_out,
        inv_count=1.0 / float(n * l_out), add_residual=add_residual)

    x_blk_bytes = c_in * length * 4
    o_blk_bytes = c_out * l_out * 4
    w_bytes = int(w.size) * 4
    p_bytes = int(packed.size) * 4
    vmem_limit = int(min(max(4 * (x_blk_bytes + o_blk_bytes) + w_bytes + p_bytes + (1 << 20),
                             16 << 20), 32 << 20))

    grid_spec = pltpu.PrefetchScalarGridSpec(
        num_scalar_prefetch=0,
        grid=(2, n),                                          # (BN phase, batch)
        in_specs=[
            pl.BlockSpec((1, c_in, length), lambda p, b: (b, 0, 0)),
            pl.BlockSpec(w.shape, lambda p, b: (0, 0, 0)),    # resident weight, DMA'd once
            pl.BlockSpec(packed.shape, lambda p, b: (0, 0)),  # packed bias/gamma/beta
        ],
        # Phase 0 parks the output window on block 0 and never writes it, so the only HBM
        # write-backs are the final phase-1 tiles (lane-dense, last dim = L).
        out_specs=pl.BlockSpec((1, c_out, l_out), lambda p, b: (p * b, 0, 0)),
        scratch_shapes=[pltpu.VMEM((c_out, 1), jnp.float32),  # per-channel sum
                        pltpu.VMEM((c_out, 1), jnp.float32)], # per-channel sum of squares
    )

    return pl.pallas_call(
        kernel,
        out_shape=jax.ShapeDtypeStruct((n, c_out, l_out), jnp.float32),
        grid_spec=grid_spec,
        compiler_params=pltpu.CompilerParams(
            # Both axes "arbitrary": phase 1 consumes stats accumulated across every batch in
            # phase 0 through the shared VMEM scratch, so the grid must run sequentially.
            dimension_semantics=("arbitrary", "arbitrary"),
            vmem_limit_bytes=vmem_limit),
        cost_estimate=pl.CostEstimate(
            flops=int(2 * 2 * n * c_out * c_in * ks * l_out),
            transcendentals=int(n * c_out),
            bytes_accessed=int(2 * n * x_blk_bytes + n * o_blk_bytes + w_bytes + p_bytes)),
    )(x.astype(jnp.float32), w, packed)


# -----------------------------------------------------------------------------------------
# Kernel 2:  out = x + MultiheadAttention(x, x, x)        (batch_first self-attention + res)
# grid = (N,) "parallel"; per-batch tile (S, E) with E on the lane axis.
# -----------------------------------------------------------------------------------------
def _mha_res_kernel(x_ref, wqkv_ref, bqkv_ref, wo_ref, bo_ref, o_ref, *,
                    num_heads, head_dim):
    # TODO(synk): nn.MultiheadAttention's second output (averaged attention weights) is
    # discarded by TransformerBlock.forward, so it is not computed here.
    x = x_ref[0]                                              # (S, E)
    e = num_heads * head_dim
    scale = 1.0 / math.sqrt(head_dim)

    # Fused Q/K/V in-projection: (S, E) @ (E, 3E)   (f32 for parity; bf16-able in production).
    qkv = jnp.dot(x, wqkv_ref[...], preferred_element_type=jnp.float32) + bqkv_ref[...]
    q = qkv[:, 0:e]
    k = qkv[:, e:2 * e]
    v = qkv[:, 2 * e:3 * e]

    ctx_parts = []
    for h in range(num_heads):                                # static unrolled head loop
        lo = h * head_dim
        q_h = q[:, lo:lo + head_dim] * scale
        k_h = k[:, lo:lo + head_dim]
        v_h = v[:, lo:lo + head_dim]
        logits = jnp.dot(q_h, k_h.T, preferred_element_type=jnp.float32)   # (S, S)
        logits = logits - jnp.max(logits, axis=-1, keepdims=True)          # stable softmax
        probs = jnp.exp(logits)
        probs = probs / jnp.sum(probs, axis=-1, keepdims=True)
        ctx_parts.append(jnp.dot(probs, v_h, preferred_element_type=jnp.float32))
    ctx = jnp.concatenate(ctx_parts, axis=-1)                 # (S, E)

    att = jnp.dot(ctx, wo_ref[...], preferred_element_type=jnp.float32) + bo_ref[...]
    o_ref[0] = x + att                                        # fused residual


def mha_self_attention_res(x, in_proj_w, in_proj_b, out_proj_w, out_proj_b, *, num_heads):
    """x + MultiheadAttention(x, x, x);  x: (N, S, E) float32 (batch_first layout)."""
    n, s, e = x.shape
    assert e % num_heads == 0
    head_dim = e // num_heads

    wqkv = jnp.transpose(in_proj_w).astype(jnp.float32)       # (E, 3E)
    bqkv = in_proj_b.reshape(1, 3 * e).astype(jnp.float32)
    wo = jnp.transpose(out_proj_w).astype(jnp.float32)        # (E, E)
    bo = out_proj_b.reshape(1, e).astype(jnp.float32)

    kernel = functools.partial(_mha_res_kernel, num_heads=num_heads, head_dim=head_dim)

    x_bytes = n * s * e * 4
    w_bytes = int(wqkv.size + bqkv.size + wo.size + bo.size) * 4
    flops = n * (2 * s * e * 3 * e + 4 * s * s * e + 2 * s * e * e)
    vmem_limit = int(min(max(8 * s * e * 4 + w_bytes + (1 << 20), 16 << 20), 32 << 20))

    grid_spec = pltpu.PrefetchScalarGridSpec(
        num_scalar_prefetch=0,
        grid=(n,),
        in_specs=[
            pl.BlockSpec((1, s, e), lambda b: (b, 0, 0)),
            pl.BlockSpec(wqkv.shape, lambda b: (0, 0)),       # resident weights, DMA'd once
            pl.BlockSpec(bqkv.shape, lambda b: (0, 0)),
            pl.BlockSpec(wo.shape, lambda b: (0, 0)),
            pl.BlockSpec(bo.shape, lambda b: (0, 0)),
        ],
        out_specs=pl.BlockSpec((1, s, e), lambda b: (b, 0, 0)),
    )

    return pl.pallas_call(
        kernel,
        out_shape=jax.ShapeDtypeStruct((n, s, e), jnp.float32),
        grid_spec=grid_spec,
        compiler_params=pltpu.CompilerParams(
            dimension_semantics=("parallel",),                # batches independent -> megacore
            vmem_limit_bytes=vmem_limit),
        cost_estimate=pl.CostEstimate(
            flops=int(flops),
            transcendentals=int(n * num_heads * s * s),
            bytes_accessed=int(2 * x_bytes + w_bytes)),
    )(x.astype(jnp.float32), wqkv, bqkv, wo, bo)


# -----------------------------------------------------------------------------------------
# Full TransformerBlock forward
# -----------------------------------------------------------------------------------------
def transformer_block_forward(x, params, *, num_heads):
    x = mlp_block_res(x, *params["fc1"])
    x = mha_self_attention_res(x, *params["att1"], num_heads=num_heads)
    x = mlp_block_res(x, *params["fc2"])
    x = mha_self_attention_res(x, *params["att2"], num_heads=num_heads)
    x = mlp_block_res(x, *params["fc3"])
    x = mha_self_attention_res(x, *params["att3"], num_heads=num_heads)
    x = mlp_block_res(x, *params["fc4"])
    x = mha_self_attention_res(x, *params["att4"], num_heads=num_heads)
    x = mlp_block_res(x, *params["fc5"])
    return x


# -----------------------------------------------------------------------------------------
# Pure-JAX reference (PyTorch semantics, high-precision matmuls)
# -----------------------------------------------------------------------------------------
def _mlp_block_ref(x, conv_w, conv_b, gamma, beta, stride=1):
    y = jax.lax.conv_general_dilated(
        x, conv_w, window_strides=(stride,), padding="VALID",
        dimension_numbers=("NCH", "OIH", "NCH"), precision=_HIGHEST)
    y = y + conv_b[None, :, None]
    mean = jnp.mean(y, axis=(0, 2), keepdims=True)
    var = jnp.mean(jnp.square(y - mean), axis=(0, 2), keepdims=True)
    y = (y - mean) * jax.lax.rsqrt(var + BN_EPS)
    y = y * gamma[None, :, None] + beta[None, :, None]
    return jnp.maximum(y, 0.0)


def _mha_ref(x, in_w, in_b, out_w, out_b, num_heads):
    n, s, e = x.shape
    dh = e // num_heads
    qkv = jnp.einsum("nse,fe->nsf", x, in_w, precision=_HIGHEST) + in_b
    q, k, v = qkv[..., :e], qkv[..., e:2 * e], qkv[..., 2 * e:]
    split = lambda t: t.reshape(n, s, num_heads, dh).transpose(0, 2, 1, 3)
    q, k, v = split(q), split(k), split(v)
    logits = jnp.einsum("nhsd,nhtd->nhst", q, k, precision=_HIGHEST) / math.sqrt(dh)
    probs = jax.nn.softmax(logits, axis=-1)
    ctx = jnp.einsum("nhst,nhtd->nhsd", probs, v, precision=_HIGHEST)
    ctx = ctx.transpose(0, 2, 1, 3).reshape(n, s, e)
    return jnp.einsum("nse,fe->nsf", ctx, out_w, precision=_HIGHEST) + out_b


def transformer_block_ref(x, params, num_heads):
    x = x + _mlp_block_ref(x, *params["fc1"])
    x = x + _mha_ref(x, *params["att1"], num_heads)
    x = x + _mlp_block_ref(x, *params["fc2"])
    x = x + _mha_ref(x, *params["att2"], num_heads)
    x = x + _mlp_block_ref(x, *params["fc3"])
    x = x + _mha_ref(x, *params["att3"], num_heads)
    x = x + _mlp_block_ref(x, *params["fc4"])
    x = x + _mha_ref(x, *params["att4"], num_heads)
    x = x + _mlp_block_ref(x, *params["fc5"])
    return x


if __name__ == "__main__":
    # Small shapes consistent with TransformerBlock: x is (batch, num_channels, input_features).
    # num_channels doubles as the attention sequence length; input_features doubles as the
    # attention embed_dim (lane axis).  The residual `x = x + fcK(x)` forces k=1, s=1.
    N = 2
    NUM_CHANNELS = 8
    INPUT_FEATURES = 128
    KERNEL_SIZE, STRIDE = 1, 1
    NUM_HEADS = 4

    key = jax.random.PRNGKey(0)
    keys = iter(jax.random.split(key, 20))

    def xavier_uniform(k, shape, fan_in, fan_out):
        bound = math.sqrt(6.0 / (fan_in + fan_out))
        return jax.random.uniform(k, shape, jnp.float32, -bound, bound)

    params = {}
    # MLPBlock init: Conv1d xavier_uniform weight, bias = 0.01; BN weight = 1, bias = 0.
    for name in ("fc1", "fc2", "fc3", "fc4", "fc5"):
        cw = xavier_uniform(next(keys), (NUM_CHANNELS, NUM_CHANNELS, KERNEL_SIZE),
                            NUM_CHANNELS * KERNEL_SIZE, NUM_CHANNELS * KERNEL_SIZE)
        params[name] = (cw,
                        jnp.full((NUM_CHANNELS,), 0.01, jnp.float32),
                        jnp.ones((NUM_CHANNELS,), jnp.float32),
                        jnp.zeros((NUM_CHANNELS,), jnp.float32))
    # MultiheadAttention init: xavier_uniform projections, in_proj bias 0, out_proj bias 0.01.
    E = INPUT_FEATURES
    for name in ("att1", "att2", "att3", "att4"):
        in_w = xavier_uniform(next(keys), (3 * E, E), E, 3 * E)
        in_b = jnp.zeros((3 * E,), jnp.float32)
        out_w = xavier_uniform(next(keys), (E, E), E, E)
        out_b = jnp.full((E,), 0.01, jnp.float32)
        params[name] = (in_w, in_b, out_w, out_b)

    x = jax.random.normal(next(keys), (N, NUM_CHANNELS, INPUT_FEATURES), jnp.float32)

    fwd = jax.jit(functools.partial(transformer_block_forward, num_heads=NUM_HEADS))
    out = jax.block_until_ready(fwd(x, params))

    ref_fn = jax.jit(functools.partial(transformer_block_ref, num_heads=NUM_HEADS))
    ref = jax.block_until_ready(ref_fn(x, params))

    np.testing.assert_allclose(np.asarray(out), np.asarray(ref), rtol=1e-3, atol=1e-3)
    assert out.shape == (N, NUM_CHANNELS, INPUT_FEATURES)
    print("KERNEL_OK")
</pallas_src>

<mosaic_0001>
module attributes {stable_mosaic.version = 11 : i64} {
  func.func @_mha_res_kernel(%arg0: i32, %arg1: memref<1x8x128xf32, #tpu.memory_space<vmem>>, %arg2: memref<128x384xf32, #tpu.memory_space<vmem>>, %arg3: memref<1x384xf32, #tpu.memory_space<vmem>>, %arg4: memref<128x128xf32, #tpu.memory_space<vmem>>, %arg5: memref<1x128xf32, #tpu.memory_space<vmem>>, %arg6: memref<1x8x128xf32, #tpu.memory_space<vmem>>) attributes {dimension_semantics = [#tpu.dimension_semantics<parallel>], iteration_bounds = array<i64: 2>, scalar_prefetch = 0 : i64, scratch_operands = 0 : i64, tpu.core_type = #tpu.core_type<tc>, window_params = [{transform_indices = @transform_0, window_bounds = array<i64: 1, 8, 128>}, {pipeline_mode = #tpu.pipeline_mode<synchronous>, transform_indices = @transform_1, window_bounds = array<i64: 128, 384>}, {pipeline_mode = #tpu.pipeline_mode<synchronous>, transform_indices = @transform_2, window_bounds = array<i64: 1, 384>}, {pipeline_mode = #tpu.pipeline_mode<synchronous>, transform_indices = @transform_3, window_bounds = array<i64: 128, 128>}, {pipeline_mode = #tpu.pipeline_mode<synchronous>, transform_indices = @transform_4, window_bounds = array<i64: 1, 128>}, {transform_indices = @transform_5, window_bounds = array<i64: 1, 8, 128>}]} {
    %c0 = arith.constant 0 : index
    %c0_0 = arith.constant 0 : index
    %c0_1 = arith.constant 0 : index
    %0 = vector.load %arg1[%c0, %c0_0, %c0_1] : memref<1x8x128xf32, #tpu.memory_space<vmem>>, vector<1x8x128xf32>
    %1 = vector.shape_cast %0 : vector<1x8x128xf32> to vector<8x128xf32>
    %c0_2 = arith.constant 0 : index
    %c0_3 = arith.constant 0 : index
    %2 = vector.load %arg2[%c0_2, %c0_3] : memref<128x384xf32, #tpu.memory_space<vmem>>, vector<128x384xf32>
    %cst = arith.constant dense<0.000000e+00> : vector<8x384xf32>
    %3 = tpu.matmul %1, %2, %cst {dimension_numbers = #tpu.dot_dimension_numbers<[1], [0], [0], [1], [0, 0, 1, 1], [], []>} : vector<8x128xf32>, vector<128x384xf32>, vector<8x384xf32> -> vector<8x384xf32>
    %c0_4 = arith.constant 0 : index
    %c0_5 = arith.constant 0 : index
    %4 = vector.load %arg3[%c0_4, %c0_5] : memref<1x384xf32, #tpu.memory_space<vmem>>, vector<1x384xf32>
    %5 = vector.broadcast %4 : vector<1x384xf32> to vector<8x384xf32>
    %6 = arith.addf %3, %5 : vector<8x384xf32>
    %7 = vector.extract_strided_slice %6 {offsets = [0, 0], sizes = [8, 128], strides = [1, 1]} : vector<8x384xf32> to vector<8x128xf32>
    %8 = vector.extract_strided_slice %6 {offsets = [0, 128], sizes = [8, 128], strides = [1, 1]} : vector<8x384xf32> to vector<8x128xf32>
    %9 = vector.extract_strided_slice %6 {offsets = [0, 256], sizes = [8, 128], strides = [1, 1]} : vector<8x384xf32> to vector<8x128xf32>
    %10 = vector.extract_strided_slice %7 {offsets = [0, 0], sizes = [8, 32], strides = [1, 1]} : vector<8x128xf32> to vector<8x32xf32>
    %cst_6 = arith.constant 0.176776692 : f32
    %11 = vector.broadcast %cst_6 : f32 to vector<8x32xf32>
    %12 = arith.mulf %10, %11 : vector<8x32xf32>
    %13 = vector.extract_strided_slice %8 {offsets = [0, 0], sizes = [8, 32], strides = [1, 1]} : vector<8x128xf32> to vector<8x32xf32>
    %14 = vector.extract_strided_slice %9 {offsets = [0, 0], sizes = [8, 32], strides = [1, 1]} : vector<8x128xf32> to vector<8x32xf32>
    %15 = tpu.transpose %13, [1, 0] : vector<8x32xf32> -> vector<32x8xf32>
    %cst_7 = arith.constant dense<0.000000e+00> : vector<8x8xf32>
    %16 = tpu.matmul %12, %15, %cst_7 {dimension_numbers = #tpu.dot_dimension_numbers<[1], [0], [0], [1], [0, 0, 1, 1], [], []>} : vector<8x32xf32>, vector<32x8xf32>, vector<8x8xf32> -> vector<8x8xf32>
    %cst_8 = arith.constant dense<0xFF800000> : vector<8xf32>
    %17 = vector.multi_reduction <maximumf>, %16, %cst_8 [1] : vector<8x8xf32> to vector<8xf32>
    %18 = vector.shape_cast %17 : vector<8xf32> to vector<8x1xf32>
    %19 = vector.broadcast %18 : vector<8x1xf32> to vector<8x8xf32>
    %20 = arith.subf %16, %19 : vector<8x8xf32>
    %21 = math.exp %20 : vector<8x8xf32>
    %cst_9 = arith.constant dense<0.000000e+00> : vector<8xf32>
    %22 = vector.multi_reduction <add>, %21, %cst_9 [1] : vector<8x8xf32> to vector<8xf32>
    %23 = vector.shape_cast %22 : vector<8xf32> to vector<8x1xf32>
    %24 = vector.broadcast %23 : vector<8x1xf32> to vector<8x8xf32>
    %25 = arith.divf %21, %24 : vector<8x8xf32>
    %cst_10 = arith.constant dense<0.000000e+00> : vector<8x32xf32>
    %26 = tpu.matmul %25, %14, %cst_10 {dimension_numbers = #tpu.dot_dimension_numbers<[1], [0], [0], [1], [0, 0, 1, 1], [], []>} : vector<8x8xf32>, vector<8x32xf32>, vector<8x32xf32> -> vector<8x32xf32>
    %27 = vector.extract_strided_slice %7 {offsets = [0, 32], sizes = [8, 32], strides = [1, 1]} : vector<8x128xf32> to vector<8x32xf32>
    %cst_11 = arith.constant 0.176776692 : f32
    %28 = vector.broadcast %cst_11 : f32 to vector<8x32xf32>
    %29 = arith.mulf %27, %28 : vector<8x32xf32>
    %30 = vector.extract_strided_slice %8 {offsets = [0, 32], sizes = [8, 32], strides = [1, 1]} : vector<8x128xf32> to vector<8x32xf32>
    %31 = vector.extract_strided_slice %9 {offsets = [0, 32], sizes = [8, 32], strides = [1, 1]} : vector<8x128xf32> to vector<8x32xf32>
    %32 = tpu.transpose %30, [1, 0] : vector<8x32xf32> -> vector<32x8xf32>
    %cst_12 = arith.constant dense<0.000000e+00> : vector<8x8xf32>
    %33 = tpu.matmul %29, %32, %cst_12 {dimension_numbers = #tpu.dot_dimension_numbers<[1], [0], [0], [1], [0, 0, 1, 1], [], []>} : vector<8x32xf32>, vector<32x8xf32>, vector<8x8xf32> -> vector<8x8xf32>
    %cst_13 = arith.constant dense<0xFF800000> : vector<8xf32>
    %34 = vector.multi_reduction <maximumf>, %33, %cst_13 [1] : vector<8x8xf32> to vector<8xf32>
    %35 = vector.shape_cast %34 : vector<8xf32> to vector<8x1xf32>
    %36 = vector.broadcast %35 : vector<8x1xf32> to vector<8x8xf32>
    %37 = arith.subf %33, %36 : vector<8x8xf32>
    %38 = math.exp %37 : vector<8x8xf32>
    %cst_14 = arith.constant dense<0.000000e+00> : vector<8xf32>
    %39 = vector.multi_reduction <add>, %38, %cst_14 [1] : vector<8x8xf32> to vector<8xf32>
    %40 = vector.shape_cast %39 : vector<8xf32> to vector<8x1xf32>
    %41 = vector.broadcast %40 : vector<8x1xf32> to vector<8x8xf32>
    %42 = arith.divf %38, %41 : vector<8x8xf32>
    %cst_15 = arith.constant dense<0.000000e+00> : vector<8x32xf32>
    %43 = tpu.matmul %42, %31, %cst_15 {dimension_numbers = #tpu.dot_dimension_numbers<[1], [0], [0], [1], [0, 0, 1, 1], [], []>} : vector<8x8xf32>, vector<8x32xf32>, vector<8x32xf32> -> vector<8x32xf32>
    %44 = vector.extract_strided_slice %7 {offsets = [0, 64], sizes = [8, 32], strides = [1, 1]} : vector<8x128xf32> to vector<8x32xf32>
    %cst_16 = arith.constant 0.176776692 : f32
    %45 = vector.broadcast %cst_16 : f32 to vector<8x32xf32>
    %46 = arith.mulf %44, %45 : vector<8x32xf32>
    %47 = vector.extract_strided_slice %8 {offsets = [0, 64], sizes = [8, 32], strides = [1, 1]} : vector<8x128xf32> to vector<8x32xf32>
    %48 = vector.extract_strided_slice %9 {offsets = [0, 64], sizes = [8, 32], strides = [1, 1]} : vector<8x128xf32> to vector<8x32xf32>
    %49 = tpu.transpose %47, [1, 0] : vector<8x32xf32> -> vector<32x8xf32>
    %cst_17 = arith.constant dense<0.000000e+00> : vector<8x8xf32>
    %50 = tpu.matmul %46, %49, %cst_17 {dimension_numbers = #tpu.dot_dimension_numbers<[1], [0], [0], [1], [0, 0, 1, 1], [], []>} : vector<8x32xf32>, vector<32x8xf32>, vector<8x8xf32> -> vector<8x8xf32>
    %cst_18 = arith.constant dense<0xFF800000> : vector<8xf32>
    %51 = vector.multi_reduction <maximumf>, %50, %cst_18 [1] : vector<8x8xf32> to vector<8xf32>
    %52 = vector.shape_cast %51 : vector<8xf32> to vector<8x1xf32>
    %53 = vector.broadcast %52 : vector<8x1xf32> to vector<8x8xf32>
    %54 = arith.subf %50, %53 : vector<8x8xf32>
    %55 = math.exp %54 : vector<8x8xf32>
    %cst_19 = arith.constant dense<0.000000e+00> : vector<8xf32>
    %56 = vector.multi_reduction <add>, %55, %cst_19 [1] : vector<8x8xf32> to vector<8xf32>
    %57 = vector.shape_cast %56 : vector<8xf32> to vector<8x1xf32>
    %58 = vector.broadcast %57 : vector<8x1xf32> to vector<8x8xf32>
    %59 = arith.divf %55, %58 : vector<8x8xf32>
    %cst_20 = arith.constant dense<0.000000e+00> : vector<8x32xf32>
    %60 = tpu.matmul %59, %48, %cst_20 {dimension_numbers = #tpu.dot_dimension_numbers<[1], [0], [0], [1], [0, 0, 1, 1], [], []>} : vector<8x8xf32>, vector<8x32xf32>, vector<8x32xf32> -> vector<8x32xf32>
    %61 = vector.extract_strided_slice %7 {offsets = [0, 96], sizes = [8, 32], strides = [1, 1]} : vector<8x128xf32> to vector<8x32xf32>
    %cst_21 = arith.constant 0.176776692 : f32
    %62 = vector.broadcast %cst_21 : f32 to vector<8x32xf32>
    %63 = arith.mulf %61, %62 : vector<8x32xf32>
    %64 = vector.extract_strided_slice %8 {offsets = [0, 96], sizes = [8, 32], strides = [1, 1]} : vector<8x128xf32> to vector<8x32xf32>
    %65 = vector.extract_strided_slice %9 {offsets = [0, 96], sizes = [8, 32], strides = [1, 1]} : vector<8x128xf32> to vector<8x32xf32>
    %66 = tpu.transpose %64, [1, 0] : vector<8x32xf32> -> vector<32x8xf32>
    %cst_22 = arith.constant dense<0.000000e+00> : vector<8x8xf32>
    %67 = tpu.matmul %63, %66, %cst_22 {dimension_numbers = #tpu.dot_dimension_numbers<[1], [0], [0], [1], [0, 0, 1, 1], [], []>} : vector<8x32xf32>, vector<32x8xf32>, vector<8x8xf32> -> vector<8x8xf32>
    %cst_23 = arith.constant dense<0xFF800000> : vector<8xf32>
    %68 = vector.multi_reduction <maximumf>, %67, %cst_23 [1] : vector<8x8xf32> to vector<8xf32>
    %69 = vector.shape_cast %68 : vector<8xf32> to vector<8x1xf32>
    %70 = vector.broadcast %69 : vector<8x1xf32> to vector<8x8xf32>
    %71 = arith.subf %67, %70 : vector<8x8xf32>
    %72 = math.exp %71 : vector<8x8xf32>
    %cst_24 = arith.constant dense<0.000000e+00> : vector<8xf32>
    %73 = vector.multi_reduction <add>, %72, %cst_24 [1] : vector<8x8xf32> to vector<8xf32>
    %74 = vector.shape_cast %73 : vector<8xf32> to vector<8x1xf32>
    %75 = vector.broadcast %74 : vector<8x1xf32> to vector<8x8xf32>
    %76 = arith.divf %72, %75 : vector<8x8xf32>
    %cst_25 = arith.constant dense<0.000000e+00> : vector<8x32xf32>
    %77 = tpu.matmul %76, %65, %cst_25 {dimension_numbers = #tpu.dot_dimension_numbers<[1], [0], [0], [1], [0, 0, 1, 1], [], []>} : vector<8x8xf32>, vector<8x32xf32>, vector<8x32xf32> -> vector<8x32xf32>
    %78 = tpu.concatenate %26, %43, %60, %77 in 1 : vector<8x32xf32>, vector<8x32xf32>, vector<8x32xf32>, vector<8x32xf32> -> vector<8x128xf32>
    %c0_26 = arith.constant 0 : index
    %c0_27 = arith.constant 0 : index
    %79 = vector.load %arg4[%c0_26, %c0_27] : memref<128x128xf32, #tpu.memory_space<vmem>>, vector<128x128xf32>
    %cst_28 = arith.constant dense<0.000000e+00> : vector<8x128xf32>
    %80 = tpu.matmul %78, %79, %cst_28 {dimension_numbers = #tpu.dot_dimension_numbers<[1], [0], [0], [1], [0, 0, 1, 1], [], []>} : vector<8x128xf32>, vector<128x128xf32>, vector<8x128xf32> -> vector<8x128xf32>
    %c0_29 = arith.constant 0 : index
    %c0_30 = arith.constant 0 : index
    %81 = vector.load %arg5[%c0_29, %c0_30] : memref<1x128xf32, #tpu.memory_space<vmem>>, vector<1x128xf32>
    %82 = vector.broadcast %81 : vector<1x128xf32> to vector<8x128xf32>
    %83 = arith.addf %80, %82 : vector<8x128xf32>
    %84 = arith.addf %1, %83 : vector<8x128xf32>
    %c0_31 = arith.constant 0 : index
    %c0_32 = arith.constant 0 : index
    %c0_33 = arith.constant 0 : index
    %85 = vector.load %arg6[%c0_31, %c0_32, %c0_33] : memref<1x8x128xf32, #tpu.memory_space<vmem>>, vector<1x8x128xf32>
    %86 = vector.shape_cast %85 : vector<1x8x128xf32> to vector<8x128xf32>
    %87 = vector.shape_cast %84 : vector<8x128xf32> to vector<1x8x128xf32>
    tpu.vector_store %arg6[%c0_31, %c0_32, %c0_33], %87 {strides = array<i32>} : memref<1x8x128xf32, #tpu.memory_space<vmem>>, vector<1x8x128xf32>,
    return
  }
  func.func @transform_0(%arg0: i32) -> (i32, i32, i32) {
    %c0_i32 = arith.constant 0 : i32
    %c0_i32_0 = arith.constant 0 : i32
    %c0_i32_1 = arith.constant 0 : i32
    return %arg0, %c0_i32, %c0_i32_0 : i32, i32, i32
  }
  func.func @transform_1(%arg0: i32) -> (i32, i32) {
    %c0_i32 = arith.constant 0 : i32
    %c0_i32_0 = arith.constant 0 : i32
    %c0_i32_1 = arith.constant 0 : i32
    return %c0_i32, %c0_i32_0 : i32, i32
  }
  func.func @transform_2(%arg0: i32) -> (i32, i32) {
    %c0_i32 = arith.constant 0 : i32
    %c0_i32_0 = arith.constant 0 : i32
    %c0_i32_1 = arith.constant 0 : i32
    return %c0_i32, %c0_i32_0 : i32, i32
  }
  func.func @transform_3(%arg0: i32) -> (i32, i32) {
    %c0_i32 = arith.constant 0 : i32
    %c0_i32_0 = arith.constant 0 : i32
    %c0_i32_1 = arith.constant 0 : i32
    return %c0_i32, %c0_i32_0 : i32, i32
  }
  func.func @transform_4(%arg0: i32) -> (i32, i32) {
    %c0_i32 = arith.constant 0 : i32
    %c0_i32_0 = arith.constant 0 : i32
    %c0_i32_1 = arith.constant 0 : i32
    return %c0_i32, %c0_i32_0 : i32, i32
  }
  func.func @transform_5(%arg0: i32) -> (i32, i32, i32) {
    %c0_i32 = arith.constant 0 : i32
    %c0_i32_0 = arith.constant 0 : i32
    %c0_i32_1 = arith.constant 0 : i32
    return %arg0, %c0_i32, %c0_i32_0 : i32, i32, i32
  }
}

module attributes {stable_mosaic.version = 11 : i64} {
  func.func @_mlp_res_kernel(%arg0: i32, %arg1: i32, %arg2: memref<1x8x128xf32, #tpu.memory_space<vmem>>, %arg3: memref<1x8x8xf32, #tpu.memory_space<vmem>>, %arg4: memref<8x3xf32, #tpu.memory_space<vmem>>, %arg5: memref<1x8x128xf32, #tpu.memory_space<vmem>>, %arg6: memref<8x1xf32, #tpu.memory_space<vmem>>, %arg7: memref<8x1xf32, #tpu.memory_space<vmem>>) attributes {dimension_semantics = [#tpu.dimension_semantics<arbitrary>, #tpu.dimension_semantics<arbitrary>], iteration_bounds = array<i64: 2, 2>, scalar_prefetch = 0 : i64, scratch_operands = 2 : i64, tpu.core_type = #tpu.core_type<tc>, window_params = [{transform_indices = @transform_0, window_bounds = array<i64: 1, 8, 128>}, {pipeline_mode = #tpu.pipeline_mode<synchronous>, transform_indices = @transform_1, window_bounds = array<i64: 1, 8, 8>}, {pipeline_mode = #tpu.pipeline_mode<synchronous>, transform_indices = @transform_2, window_bounds = array<i64: 8, 3>}, {transform_indices = @transform_3, window_bounds = array<i64: 1, 8, 128>}]} {
    %c0_i32 = arith.constant 0 : i32
    %0 = arith.cmpi eq, %arg0, %c0_i32 : i32
    %c0_i32_0 = arith.constant 0 : i32
    %1 = arith.cmpi eq, %arg1, %c0_i32_0 : i32
    %2 = arith.andi %0, %1 : i1
    %3 = arith.extui %2 : i1 to i32
    %c0_i32_1 = arith.constant 0 : i32
    %4 = arith.cmpi ne, %3, %c0_i32_1 : i32
    scf.if %4 {
      %cst_12 = arith.constant 0.000000e+00 : f32
      %19 = vector.broadcast %cst_12 : f32 to vector<8x1xf32>
      %c0_13 = arith.constant 0 : index
      %c0_14 = arith.constant 0 : index
      %20 = vector.load %arg6[%c0_13, %c0_14] : memref<8x1xf32, #tpu.memory_space<vmem>>, vector<8x1xf32>
      tpu.vector_store %arg6[%c0_13, %c0_14], %19 {strides = array<i32>} : memref<8x1xf32, #tpu.memory_space<vmem>>, vector<8x1xf32>,
      %cst_15 = arith.constant 0.000000e+00 : f32
      %21 = vector.broadcast %cst_15 : f32 to vector<8x1xf32>
      %c0_16 = arith.constant 0 : index
      %c0_17 = arith.constant 0 : index
      %22 = vector.load %arg7[%c0_16, %c0_17] : memref<8x1xf32, #tpu.memory_space<vmem>>, vector<8x1xf32>
      tpu.vector_store %arg7[%c0_16, %c0_17], %21 {strides = array<i32>} : memref<8x1xf32, #tpu.memory_space<vmem>>, vector<8x1xf32>,
    } else {
    }
    %c0 = arith.constant 0 : index
    %c0_2 = arith.constant 0 : index
    %5 = vector.load %arg4[%c0, %c0_2] : memref<8x3xf32, #tpu.memory_space<vmem>>, vector<8x1xf32>
    %c0_3 = arith.constant 0 : index
    %c0_4 = arith.constant 0 : index
    %c0_5 = arith.constant 0 : index
    %6 = vector.load %arg2[%c0_3, %c0_4, %c0_5] : memref<1x8x128xf32, #tpu.memory_space<vmem>>, vector<1x8x128xf32>
    %7 = vector.shape_cast %6 : vector<1x8x128xf32> to vector<8x128xf32>
    %c0_6 = arith.constant 0 : index
    %c0_7 = arith.constant 0 : index
    %c0_8 = arith.constant 0 : index
    %8 = vector.load %arg3[%c0_6, %c0_7, %c0_8] : memref<1x8x8xf32, #tpu.memory_space<vmem>>, vector<1x8x8xf32>
    %9 = vector.shape_cast %8 : vector<1x8x8xf32> to vector<8x8xf32>
    %cst = arith.constant dense<0.000000e+00> : vector<8x128xf32>
    %10 = tpu.matmul %9, %7, %cst {dimension_numbers = #tpu.dot_dimension_numbers<[1], [0], [0], [1], [0, 0, 1, 1], [], []>} : vector<8x8xf32>, vector<8x128xf32>, vector<8x128xf32> -> vector<8x128xf32>
    %11 = vector.broadcast %5 : vector<8x1xf32> to vector<8x128xf32>
    %12 = arith.addf %10, %11 : vector<8x128xf32>
    %c0_i32_9 = arith.constant 0 : i32
    %13 = arith.cmpi eq, %arg0, %c0_i32_9 : i32
    %14 = arith.extui %13 : i1 to i32
    %c0_i32_10 = arith.constant 0 : i32
    %15 = arith.cmpi ne, %14, %c0_i32_10 : i32
    scf.if %15 {
      %c0_12 = arith.constant 0 : index
      %c0_13 = arith.constant 0 : index
      %19 = vector.load %arg6[%c0_12, %c0_13] : memref<8x1xf32, #tpu.memory_space<vmem>>, vector<8x1xf32>
      %cst_14 = arith.constant dense<0.000000e+00> : vector<8xf32>
      %20 = vector.multi_reduction <add>, %12, %cst_14 [1] : vector<8x128xf32> to vector<8xf32>
      %21 = vector.shape_cast %20 : vector<8xf32> to vector<8x1xf32>
      %22 = arith.addf %19, %21 : vector<8x1xf32>
      %c0_15 = arith.constant 0 : index
      %c0_16 = arith.constant 0 : index
      %23 = vector.load %arg6[%c0_15, %c0_16] : memref<8x1xf32, #tpu.memory_space<vmem>>, vector<8x1xf32>
      tpu.vector_store %arg6[%c0_15, %c0_16], %22 {strides = array<i32>} : memref<8x1xf32, #tpu.memory_space<vmem>>, vector<8x1xf32>,
      %c0_17 = arith.constant 0 : index
      %c0_18 = arith.constant 0 : index
      %24 = vector.load %arg7[%c0_17, %c0_18] : memref<8x1xf32, #tpu.memory_space<vmem>>, vector<8x1xf32>
      %25 = arith.mulf %12, %12 : vector<8x128xf32>
      %cst_19 = arith.constant dense<0.000000e+00> : vector<8xf32>
      %26 = vector.multi_reduction <add>, %25, %cst_19 [1] : vector<8x128xf32> to vector<8xf32>
      %27 = vector.shape_cast %26 : vector<8xf32> to vector<8x1xf32>
      %28 = arith.addf %24, %27 : vector<8x1xf32>
      %c0_20 = arith.constant 0 : index
      %c0_21 = arith.constant 0 : index
      %29 = vector.load %arg7[%c0_20, %c0_21] : memref<8x1xf32, #tpu.memory_space<vmem>>, vector<8x1xf32>
      tpu.vector_store %arg7[%c0_20, %c0_21], %28 {strides = array<i32>} : memref<8x1xf32, #tpu.memory_space<vmem>>, vector<8x1xf32>,
    } else {
    }
    %c1_i32 = arith.constant 1 : i32
    %16 = arith.cmpi eq, %arg0, %c1_i32 : i32
    %17 = arith.extui %16 : i1 to i32
    %c0_i32_11 = arith.constant 0 : i32
    %18 = arith.cmpi ne, %17, %c0_i32_11 : i32
    scf.if %18 {
      %c0_12 = arith.constant 0 : index
      %c0_13 = arith.constant 0 : index
      %19 = vector.load %arg6[%c0_12, %c0_13] : memref<8x1xf32, #tpu.memory_space<vmem>>, vector<8x1xf32>
      %cst_14 = arith.constant 3.906250e-03 : f32
      %20 = vector.broadcast %cst_14 : f32 to vector<8x1xf32>
      %21 = arith.mulf %19, %20 : vector<8x1xf32>
      %c0_15 = arith.constant 0 : index
      %c0_16 = arith.constant 0 : index
      %22 = vector.load %arg7[%c0_15, %c0_16] : memref<8x1xf32, #tpu.memory_space<vmem>>, vector<8x1xf32>
      %cst_17 = arith.constant 3.906250e-03 : f32
      %23 = vector.broadcast %cst_17 : f32 to vector<8x1xf32>
      %24 = arith.mulf %22, %23 : vector<8x1xf32>
      %25 = arith.mulf %21, %21 : vector<8x1xf32>
      %26 = arith.subf %24, %25 : vector<8x1xf32>
      %cst_18 = arith.constant 0.000000e+00 : f32
      %27 = vector.broadcast %cst_18 : f32 to vector<8x1xf32>
      %28 = arith.maximumf %26, %27 : vector<8x1xf32>
      %c0_19 = arith.constant 0 : index
      %c1 = arith.constant 1 : index
      %29 = vector.load %arg4[%c0_19, %c1] : memref<8x3xf32, #tpu.memory_space<vmem>>, vector<8x1xf32>
      %c0_20 = arith.constant 0 : index
      %c2 = arith.constant 2 : index
      %30 = vector.load %arg4[%c0_20, %c2] : memref<8x3xf32, #tpu.memory_space<vmem>>, vector<8x1xf32>
      %cst_21 = arith.constant 9.99999974E-6 : f32
      %31 = vector.broadcast %cst_21 : f32 to vector<8x1xf32>
      %32 = arith.addf %28, %31 : vector<8x1xf32>
      %33 = math.rsqrt %32 : vector<8x1xf32>
      %34 = arith.mulf %29, %33 : vector<8x1xf32>
      %35 = arith.mulf %21, %34 : vector<8x1xf32>
      %36 = arith.subf %30, %35 : vector<8x1xf32>
      %37 = vector.broadcast %34 : vector<8x1xf32> to vector<8x128xf32>
      %38 = arith.mulf %12, %37 : vector<8x128xf32>
      %39 = vector.broadcast %36 : vector<8x1xf32> to vector<8x128xf32>
      %40 = arith.addf %38, %39 : vector<8x128xf32>
      %cst_22 = arith.constant 0.000000e+00 : f32
      %41 = vector.broadcast %cst_22 : f32 to vector<8x128xf32>
      %42 = arith.maximumf %40, %41 : vector<8x128xf32>
      %43 = arith.addf %7, %42 : vector<8x128xf32>
      %c0_23 = arith.constant 0 : index
      %c0_24 = arith.constant 0 : index
      %c0_25 = arith.constant 0 : index
      %44 = vector.load %arg5[%c0_23, %c0_24, %c0_25] : memref<1x8x128xf32, #tpu.memory_space<vmem>>, vector<1x8x128xf32>
      %45 = vector.shape_cast %44 : vector<1x8x128xf32> to vector<8x128xf32>
      %46 = vector.shape_cast %43 : vector<8x128xf32> to vector<1x8x128xf32>
      tpu.vector_store %arg5[%c0_23, %c0_24, %c0_25], %46 {strides = array<i32>} : memref<1x8x128xf32, #tpu.memory_space<vmem>>, vector<1x8x128xf32>,
    } else {
    }
    return
  }
  func.func @transform_0(%arg0: i32, %arg1: i32) -> (i32, i32, i32) {
    %c0_i32 = arith.constant 0 : i32
    %c0_i32_0 = arith.constant 0 : i32
    %c0_i32_1 = arith.constant 0 : i32
    return %arg1, %c0_i32, %c0_i32_0 : i32, i32, i32
  }
  func.func @transform_1(%arg0: i32, %arg1: i32) -> (i32, i32, i32) {
    %c0_i32 = arith.constant 0 : i32
    %c0_i32_0 = arith.constant 0 : i32
    %c0_i32_1 = arith.constant 0 : i32
    %c0_i32_2 = arith.constant 0 : i32
    return %c0_i32, %c0_i32_0, %c0_i32_1 : i32, i32, i32
  }
  func.func @transform_2(%arg0: i32, %arg1: i32) -> (i32, i32) {
    %c0_i32 = arith.constant 0 : i32
    %c0_i32_0 = arith.constant 0 : i32
    %c0_i32_1 = arith.constant 0 : i32
    return %c0_i32, %c0_i32_0 : i32, i32
  }
  func.func @transform_3(%arg0: i32, %arg1: i32) -> (i32, i32, i32) {
    %0 = arith.muli %arg0, %arg1 : i32
    %c0_i32 = arith.constant 0 : i32
    %c0_i32_0 = arith.constant 0 : i32
    %c0_i32_1 = arith.constant 0 : i32
    return %0, %c0_i32, %c0_i32_0 : i32, i32, i32
  }
}

module attributes {stable_mosaic.version = 11 : i64} {
  func.func @_mlp_res_kernel(%arg0: i32, %arg1: i32, %arg2: memref<1x8x128xf32, #tpu.memory_space<vmem>>, %arg3: memref<1x8x8xf32, #tpu.memory_space<vmem>>, %arg4: memref<8x3xf32, #tpu.memory_space<vmem>>, %arg5: memref<1x8x128xf32, #tpu.memory_space<vmem>>, %arg6: memref<8x1xf32, #tpu.memory_space<vmem>>, %arg7: memref<8x1xf32, #tpu.memory_space<vmem>>) attributes {dimension_semantics = [#tpu.dimension_semantics<arbitrary>, #tpu.dimension_semantics<arbitrary>], iteration_bounds = array<i64: 2, 2>, scalar_prefetch = 0 : i64, scratch_operands = 2 : i64, tpu.core_type = #tpu.core_type<tc>, window_params = [{transform_indices = @transform_0, window_bounds = array<i64: 1, 8, 128>}, {pipeline_mode = #tpu.pipeline_mode<synchronous>, transform_indices = @transform_1, window_bounds = array<i64: 1, 8, 8>}, {pipeline_mode = #tpu.pipeline_mode<synchronous>, transform_indices = @transform_2, window_bounds = array<i64: 8, 3>}, {transform_indices = @transform_3, window_bounds = array<i64: 1, 8, 128>}]} {
    %c0_i32 = arith.constant 0 : i32
    %0 = arith.cmpi eq, %arg0, %c0_i32 : i32
    %c0_i32_0 = arith.constant 0 : i32
    %1 = arith.cmpi eq, %arg1, %c0_i32_0 : i32
    %2 = arith.andi %0, %1 : i1
    %3 = arith.extui %2 : i1 to i32
    %c0_i32_1 = arith.constant 0 : i32
    %4 = arith.cmpi ne, %3, %c0_i32_1 : i32
    scf.if %4 {
      %cst_12 = arith.constant 0.000000e+00 : f32
      %19 = vector.broadcast %cst_12 : f32 to vector<8x1xf32>
      %c0_13 = arith.constant 0 : index
      %c0_14 = arith.constant 0 : index
      %20 = vector.load %arg6[%c0_13, %c0_14] : memref<8x1xf32, #tpu.memory_space<vmem>>, vector<8x1xf32>
      tpu.vector_store %arg6[%c0_13, %c0_14], %19 {strides = array<i32>} : memref<8x1xf32, #tpu.memory_space<vmem>>, vector<8x1xf32>,
      %cst_15 = arith.constant 0.000000e+00 : f32
      %21 = vector.broadcast %cst_15 : f32 to vector<8x1xf32>
      %c0_16 = arith.constant 0 : index
      %c0_17 = arith.constant 0 : index
      %22 = vector.load %arg7[%c0_16, %c0_17] : memref<8x1xf32, #tpu.memory_space<vmem>>, vector<8x1xf32>
      tpu.vector_store %arg7[%c0_16, %c0_17], %21 {strides = array<i32>} : memref<8x1xf32, #tpu.memory_space<vmem>>, vector<8x1xf32>,
    } else {
    }
    %c0 = arith.constant 0 : index
    %c0_2 = arith.constant 0 : index
    %5 = vector.load %arg4[%c0, %c0_2] : memref<8x3xf32, #tpu.memory_space<vmem>>, vector<8x1xf32>
    %c0_3 = arith.constant 0 : index
    %c0_4 = arith.constant 0 : index
    %c0_5 = arith.constant 0 : index
    %6 = vector.load %arg2[%c0_3, %c0_4, %c0_5] : memref<1x8x128xf32, #tpu.memory_space<vmem>>, vector<1x8x128xf32>
    %7 = vector.shape_cast %6 : vector<1x8x128xf32> to vector<8x128xf32>
    %c0_6 = arith.constant 0 : index
    %c0_7 = arith.constant 0 : index
    %c0_8 = arith.constant 0 : index
    %8 = vector.load %arg3[%c0_6, %c0_7, %c0_8] : memref<1x8x8xf32, #tpu.memory_space<vmem>>, vector<1x8x8xf32>
    %9 = vector.shape_cast %8 : vector<1x8x8xf32> to vector<8x8xf32>
    %cst = arith.constant dense<0.000000e+00> : vector<8x128xf32>
    %10 = tpu.matmul %9, %7, %cst {dimension_numbers = #tpu.dot_dimension_numbers<[1], [0], [0], [1], [0, 0, 1, 1], [], []>} : vector<8x8xf32>, vector<8x128xf32>, vector<8x128xf32> -> vector<8x128xf32>
    %11 = vector.broadcast %5 : vector<8x1xf32> to vector<8x128xf32>
    %12 = arith.addf %10, %11 : vector<8x128xf32>
    %c0_i32_9 = arith.constant 0 : i32
    %13 = arith.cmpi eq, %arg0, %c0_i32_9 : i32
    %14 = arith.extui %13 : i1 to i32
    %c0_i32_10 = arith.constant 0 : i32
    %15 = arith.cmpi ne, %14, %c0_i32_10 : i32
    scf.if %15 {
      %c0_12 = arith.constant 0 : index
      %c0_13 = arith.constant 0 : index
      %19 = vector.load %arg6[%c0_12, %c0_13] : memref<8x1xf32, #tpu.memory_space<vmem>>, vector<8x1xf32>
      %cst_14 = arith.constant dense<0.000000e+00> : vector<8xf32>
      %20 = vector.multi_reduction <add>, %12, %cst_14 [1] : vector<8x128xf32> to vector<8xf32>
      %21 = vector.shape_cast %20 : vector<8xf32> to vector<8x1xf32>
      %22 = arith.addf %19, %21 : vector<8x1xf32>
      %c0_15 = arith.constant 0 : index
      %c0_16 = arith.constant 0 : index
      %23 = vector.load %arg6[%c0_15, %c0_16] : memref<8x1xf32, #tpu.memory_space<vmem>>, vector<8x1xf32>
      tpu.vector_store %arg6[%c0_15, %c0_16], %22 {strides = array<i32>} : memref<8x1xf32, #tpu.memory_space<vmem>>, vector<8x1xf32>,
      %c0_17 = arith.constant 0 : index
      %c0_18 = arith.constant 0 : index
      %24 = vector.load %arg7[%c0_17, %c0_18] : memref<8x1xf32, #tpu.memory_space<vmem>>, vector<8x1xf32>
      %25 = arith.mulf %12, %12 : vector<8x128xf32>
      %cst_19 = arith.constant dense<0.000000e+00> : vector<8xf32>
      %26 = vector.multi_reduction <add>, %25, %cst_19 [1] : vector<8x128xf32> to vector<8xf32>
      %27 = vector.shape_cast %26 : vector<8xf32> to vector<8x1xf32>
      %28 = arith.addf %24, %27 : vector<8x1xf32>
      %c0_20 = arith.constant 0 : index
      %c0_21 = arith.constant 0 : index
      %29 = vector.load %arg7[%c0_20, %c0_21] : memref<8x1xf32, #tpu.memory_space<vmem>>, vector<8x1xf32>
      tpu.vector_store %arg7[%c0_20, %c0_21], %28 {strides = array<i32>} : memref<8x1xf32, #tpu.memory_space<vmem>>, vector<8x1xf32>,
    } else {
    }
    %c1_i32 = arith.constant 1 : i32
    %16 = arith.cmpi eq, %arg0, %c1_i32 : i32
    %17 = arith.extui %16 : i1 to i32
    %c0_i32_11 = arith.constant 0 : i32
    %18 = arith.cmpi ne, %17, %c0_i32_11 : i32
    scf.if %18 {
      %c0_12 = arith.constant 0 : index
      %c0_13 = arith.constant 0 : index
      %19 = vector.load %arg6[%c0_12, %c0_13] : memref<8x1xf32, #tpu.memory_space<vmem>>, vector<8x1xf32>
      %cst_14 = arith.constant 3.906250e-03 : f32
      %20 = vector.broadcast %cst_14 : f32 to vector<8x1xf32>
      %21 = arith.mulf %19, %20 : vector<8x1xf32>
      %c0_15 = arith.constant 0 : index
      %c0_16 = arith.constant 0 : index
      %22 = vector.load %arg7[%c0_15, %c0_16] : memref<8x1xf32, #tpu.memory_space<vmem>>, vector<8x1xf32>
      %cst_17 = arith.constant 3.906250e-03 : f32
      %23 = vector.broadcast %cst_17 : f32 to vector<8x1xf32>
      %24 = arith.mulf %22, %23 : vector<8x1xf32>
      %25 = arith.mulf %21, %21 : vector<8x1xf32>
      %26 = arith.subf %24, %25 : vector<8x1xf32>
      %cst_18 = arith.constant 0.000000e+00 : f32
      %27 = vector.broadcast %cst_18 : f32 to vector<8x1xf32>
      %28 = arith.maximumf %26, %27 : vector<8x1xf32>
      %c0_19 = arith.constant 0 : index
      %c1 = arith.constant 1 : index
      %29 = vector.load %arg4[%c0_19, %c1] : memref<8x3xf32, #tpu.memory_space<vmem>>, vector<8x1xf32>
      %c0_20 = arith.constant 0 : index
      %c2 = arith.constant 2 : index
      %30 = vector.load %arg4[%c0_20, %c2] : memref<8x3xf32, #tpu.memory_space<vmem>>, vector<8x1xf32>
      %cst_21 = arith.constant 9.99999974E-6 : f32
      %31 = vector.broadcast %cst_21 : f32 to vector<8x1xf32>
      %32 = arith.addf %28, %31 : vector<8x1xf32>
      %33 = math.rsqrt %32 : vector<8x1xf32>
      %34 = arith.mulf %29, %33 : vector<8x1xf32>
      %35 = arith.mulf %21, %34 : vector<8x1xf32>
      %36 = arith.subf %30, %35 : vector<8x1xf32>
      %37 = vector.broadcast %34 : vector<8x1xf32> to vector<8x128xf32>
      %38 = arith.mulf %12, %37 : vector<8x128xf32>
      %39 = vector.broadcast %36 : vector<8x1xf32> to vector<8x128xf32>
      %40 = arith.addf %38, %39 : vector<8x128xf32>
      %cst_22 = arith.constant 0.000000e+00 : f32
      %41 = vector.broadcast %cst_22 : f32 to vector<8x128xf32>
      %42 = arith.maximumf %40, %41 : vector<8x128xf32>
      %43 = arith.addf %7, %42 : vector<8x128xf32>
      %c0_23 = arith.constant 0 : index
      %c0_24 = arith.constant 0 : index
      %c0_25 = arith.constant 0 : index
      %44 = vector.load %arg5[%c0_23, %c0_24, %c0_25] : memref<1x8x128xf32, #tpu.memory_space<vmem>>, vector<1x8x128xf32>
      %45 = vector.shape_cast %44 : vector<1x8x128xf32> to vector<8x128xf32>
      %46 = vector.shape_cast %43 : vector<8x128xf32> to vector<1x8x128xf32>
      tpu.vector_store %arg5[%c0_23, %c0_24, %c0_25], %46 {strides = array<i32>} : memref<1x8x128xf32, #tpu.memory_space<vmem>>, vector<1x8x128xf32>,
    } else {
    }
    return
  }
  func.func @transform_0(%arg0: i32, %arg1: i32) -> (i32, i32, i32) {
    %c0_i32 = arith.constant 0 : i32
    %c0_i32_0 = arith.constant 0 : i32
    %c0_i32_1 = arith.constant 0 : i32
    return %arg1, %c0_i32, %c0_i32_0 : i32, i32, i32
  }
  func.func @transform_1(%arg0: i32, %arg1: i32) -> (i32, i32, i32) {
    %c0_i32 = arith.constant 0 : i32
    %c0_i32_0 = arith.constant 0 : i32
    %c0_i32_1 = arith.constant 0 : i32
    %c0_i32_2 = arith.constant 0 : i32
    return %c0_i32, %c0_i32_0, %c0_i32_1 : i32, i32, i32
  }
  func.func @transform_2(%arg0: i32, %arg1: i32) -> (i32, i32) {
    %c0_i32 = arith.constant 0 : i32
    %c0_i32_0 = arith.constant 0 : i32
    %c0_i32_1 = arith.constant 0 : i32
    return %c0_i32, %c0_i32_0 : i32, i32
  }
  func.func @transform_3(%arg0: i32, %arg1: i32) -> (i32, i32, i32) {
    %0 = arith.muli %arg0, %arg1 : i32
    %c0_i32 = arith.constant 0 : i32
    %c0_i32_0 = arith.constant 0 : i32
    %c0_i32_1 = arith.constant 0 : i32
    return %0, %c0_i32, %c0_i32_0 : i32, i32, i32
  }
}

</mosaic_0001>

<bundles_post_ra>
// kernel: transformer_block_forward.17
= control target key start
LH: loop header
LB: loop body
LE: loop exit
PB: predicated region body
PF: predicated region fallthrough
CT: control target
= control target key end

     0   :  { %8 = vsyncpa [#allocation5], 0  ;;  %s745_s0 = inlined_call_operand.vmem [shape: f32[2,8,128], index: 0, kind: input, shape index: {}]   ;;  %s746_s1 = inlined_call_operand.vmem [shape: f32[1,8,8], index: 1, kind: input, shape index: {}]   ;;  %s747_s2 = inlined_call_operand.vmem [shape: f32[8,3], index: 2, kind: input, shape index: {}]   ;;  %s748_s3 = inlined_call_operand.hbm [shape: f32[2,8,128], index: 3, kind: output, shape index: {}]  }
   0x1   :  { %10 = vsyncpa [#allocation5 + $0x1], 0  ;;  %s597_s12 = smov 0   ;;  %s599_s13 = smov 0  }
   0x2   :  { %s601_s14 = smov 0   ;;  %s603_s15 = smov 0  }
   0x3   :  { %s605_s16 = smov 0   ;;  %s607_s17 = smov 0  }
   0x4   :  { %s609_s18 = smov 0   ;;  %s611_s19 = smov 0  }
   0x5 LB: > { %s376_s20 = sadd.s32 4294967295, %s568_s19   ;;  %s377_s21 = sadd.s32 4294967294, %s568_s19   ;;  %s568_s19 = sphi %s611_s19, %s16_s19   ;;  %s564_s18 = sphi %s609_s18, %s757_s18   ;;  %s560_s17 = sphi %s607_s17, %s756_s17   ;;  %s556_s16 = sphi %s605_s16, %s755_s16   ;;  %s552_s15 = sphi %s603_s15, %s754_s15   ;;  %s548_s14 = sphi %s601_s14, %s753_s14   ;;  %s544_s13 = sphi %s599_s13, %s752_s13   ;;  %s540_s12 = sphi %s597_s12, %s751_s12  }
   0x6   : > { %s25_s22 = sadd.s32 1, %s560_s17  ;;  %s28_s23 = sadd.s32 1, %s564_s18 }
   0x7   : > { %p26_p0 = scmp.ge.s32.totalorder %s25_s22, 2  ;;  %s100_s24 = smul.u32 %s560_s17, %s564_s18 }
   0x8   : > { %p115_p1 = scmp.ne.s32.totalorder %s548_s14, %s544_s13  ;;  %p116_p2 = scmp.eq.s32.totalorder %s376_s20, 3 }
   0x9   : > { %s759_s22 = smov (%p26_p0, %s25_s22), 0  ;;  %s761_s23 = smov (!%p26_p0, %s28_s23), %s564_s18 }
   0xa   : > { %p121_p3 = scmp.ne.s32.totalorder %s544_s13, %s540_s12  ;;  %p30_p4 = scmp.ge.s32.totalorder %s761_s23, 2 }
   0xb   : > { %p122_p5 = scmp.eq.s32.totalorder %s377_s21, 3  ;;  %p650_p6 = por %p116_p2, %p115_p1 }
   0xc   : > { %p380_p7 = scmp.ge.s32.totalorder %s568_s19, 1  ;;  %s763_s23 = smov (%p30_p4, %s761_s23), 0 }
   0xd   : > { %p657_p8 = por %p122_p5, %p121_p3  ;;  %p153_p9 = scmp.lt.s32.totalorder %s568_s19, 5 }
   0xe   : > { %s101_s27 = smul.u32 %s763_s23, %s759_s22  ;;  %s105_s29 = sadd.s32 1, %s548_s14 }
   0xf   : > { %p154_p10 = pnand %p380_p7, %p153_p9 }
  0x10   : > { %s102_s28 = ssub.s32 %s100_s24, %s101_s27  ;;  %s173_s4 = sand.u32 (!%p154_p10), 1, %s544_s13  }
  0x11   : > { %p103_p11 = scmp.eq.s32.totalorder %s102_s28, 0  ;;  %157 = sbr.rel (%p154_p10) target bundleno = 792 (0x318), region = 32 }
  0x12   : > { %p176_p12 = scmp.lt.s32.totalorder (!%p154_p10), %s552_s15, 1  ;;  %s672_s5 = sshll.u32 (!%p154_p10), %s173_s4, 3 }
  0x13   : > { %s666_s30 = scalar_select %p103_p11, %s548_s14, %s105_s29  }
  0x14   : > { %p181_p13 = scmp.eq.s32.totalorder (!%p154_p10), %s556_s16, 0  ;;  %p182_p0 = scmp.eq.s32.totalorder (!%p154_p10), %s552_s15, 0 }
  0x15   : > { %s175_s11 = scalar_lea.vmem (!%p154_p10), [#allocation4], %s672_s5 }
  0x16   : > { %s177_s6 = scalar_select %p176_p12, %s552_s15, 1 }
  0x17   : > { %p183_p1 = pnand %p182_p0, %p181_p13 }
  0x18   : > { %s382_s7 = sshll.u32 %s177_s6, 3 }
  0x19   : > { %s179_s10 = scalar_lea.vmem %s745_s0, %s382_s7  ;;  %186 = sbr.rel (%p183_p1) target bundleno = 33 (0x21), region = 36 }
  0x1e   : > { %vm187_vm0 = vcmask 7168   ;;  %v570_v0 = vmov 0.0  }
  0x1f   : > { %188 = vst.msk [vmem:[#allocation2] sm:$0xff] %vm187_vm0, %v570_v0 }
  0x20   : > { %189 = vst.msk [vmem:[#allocation3] sm:$0xff] %vm187_vm0, %v570_v0 }
  0x21 PF: > { %v681_v1 = vld [vmem:[%s179_s10] sm:$0xff]  ;;  %vm198_vm1 = vcmask 64512   ;;  %v571_v4 = vmov 0   ;;  %p384_p2 = scmp.ne.s32.totalorder %s556_s16, 0 }
  0x22   : > { %v192_v2 = vld [vmem:[%s746_s1] sm:$0xff]  ;;  %217 = vmatpush.msra.mxu0 %v681_v1  ;;  %468 = vset.pattern.permute.xlu0 %v571_v4 }
  0x23   : > { %v190_v3 = vld [vmem:[%s747_s2] sm:$0xff]  ;;  %383 = vmatmul.msk.f32.vlgmr.msra.gmra.mxu0 %vm198_vm1, %v192_v2 }
  0x24   : > { %195 = vperm.xlu0 %468, %v190_v3  }
  0x96   : > { %v196_v5 = vpop.permute.xlu0 %195 }
  0x9d   : > { %224 = sbr.rel (%p384_p2) target bundleno = 290 (0x122), region = 40 }
  0xa0   : > { %v219_v6 = vpop.f32.mrf.mxu0 }
  0xa1   : > { %v220_v7 = vadd.f32 %v219_v6, %v196_v5 }
  0xa2   : > { %v225_v9 = vld [vmem:[#allocation2] sm:$0xff]  ;;  %vm229_vm2 = vcmask 7168   ;;  %v231_v12 = vld [vmem:[#allocation3] sm:$0xff] }
  0xa3   : > { %226 = vadd.xlane.f32.xlu0 %v220_v7  ;;  %v232_v8 = vmul.f32 %v220_v7, %v220_v7 }
  0xab   : > { %233 = vadd.xlane.f32.xlu0 %v232_v8 }
 0x116   : > { %v227_v10 = vpop.xlane.xlu0 %226 }
 0x117   : > { %v228_v11 = vadd.f32 %v227_v10, %v225_v9 }
 0x119   : > { %230 = vst.msk [vmem:[#allocation2] sm:$0xff] %vm229_vm2, %v228_v11 }
 0x11e   : > { %v234_v13 = vpop.xlane.xlu0 %233 }
 0x11f   : > { %v235_v14 = vadd.f32 %v234_v13, %v231_v12 }
 0x121   : > { %236 = vst.msk [vmem:[#allocation3] sm:$0xff] %vm229_vm2, %v235_v14 }
 0x122 PF: > { %p385_p3 = scmp.ne.s32.totalorder %s556_s16, 1 }
 0x123   : > { %s572_s28 = smov (!%p385_p3), 1   ;;  %s573_s7 = smov (!%p385_p3), 127  }
 0x124   : > { %240 = sbr.rel (%p385_p3) target bundleno = 775 (0x307), region = 44  ;;  %s575_s8 = smov (!%p385_p3), 2  }
 0x129   : > { %v241_v15 = vld [vmem:[#allocation2] sm:$0xff]  ;;  %v243_v16 = vld [vmem:[#allocation3] sm:$0xff]  ;;  %v574_v33 = vmov 1   ;;  %v576_v36 = vmov 2  }
 0x12a   : > { %v242_v17 = vmul.f32 0.00390625, %v241_v15  ;;  %v244_v18 = vmul.f32 0.00390625, %v243_v16  ;;  %v248_v30 = vld [vmem:[%s747_s2] sm:$0xff]  ;;  %469 = vset.pattern.permute.xlu1 %v574_v33  ;;  %470 = vset.pattern.permute.xlu2 %v576_v36 }
 0x12b   : > { %471 = vset.pattern.permute.xlu0 %v576_v36 }
 0x12c   : > { %v245_v19 = vmul.f32 %v242_v17, %v242_v17 }
 0x12e   : > { %v246_v20 = vsub.f32 %v244_v18, %v245_v19 }
 0x130   : > { %v247_v21 = vmax.f32 %v246_v20, 0.0 }
 0x132   : > { %v249_v22 = vadd.f32 1e-05, %v247_v21 }
 0x134   : > { %472 = vrsqrt.f32 %v249_v22  ;;  %vm256_vm3 = vweird.f32 %v249_v22 }
 0x13a   : > { %v473_v23 = vpop.eup %472 }
 0x13b   : > { %v251_v24 = vmul.f32 %v473_v23, %v249_v22  ;;  %vm257_vm4 = vweird.f32 %v473_v23 }
 0x13c   : > { %vm258_vm5 = vmor %vm256_vm3, %vm257_vm4 }
 0x13d   : > { %v252_v25 = vmul.f32 %v473_v23, %v251_v24 }
 0x13f   : > { %v253_v26 = vmul.f32 0.5, %v252_v25 }
 0x141   : > { %v254_v27 = vsub.f32 1.5, %v253_v26 }
 0x143   : > { %v255_v28 = vmul.f32 %v473_v23, %v254_v27 }
 0x145   : > { %v259_v29 = vsel %vm258_vm5, %v473_v23, %v255_v28 }
 0x146   : > { %261 = vrot.lane.b32.xlu0 %v259_v29, %s572_s28 }
 0x1b8   : > { %v262_v31 = vpop.permute.xlu0 %261 }
 0x1b9   : > { %v264_v32 = vmul.f32 %v262_v31, %v248_v30 }
 0x1bb   : > { %266 = vrot.lane.b32.xlu0 %v264_v32, %s573_s7 }
 0x22d   : > { %v267_v34 = vpop.permute.xlu0 %266 }
 0x22e   : > { %v269_v35 = vmul.f32 %v267_v34, %v242_v17 }
 0x230   : > { %271 = vrot.lane.b32.xlu1 %v269_v35, %s575_s8 }
 0x238   : > { %276 = vperm.xlu1 %469, %v264_v32  }
 0x2a2   : > { %v272_v37 = vpop.permute.xlu1 %271 }
 0x2a3   : > { %v274_v38 = vsub.f32 %v248_v30, %v272_v37 }
 0x2a5   : > { %282 = vperm.xlu2 %470, %v274_v38  }
 0x2aa   : > { %v277_v39 = vpop.permute.xlu1 %276 }
 0x2ab   : > { %v279_v40 = vmul.f32 %v277_v39, %v220_v7 }
 0x2ff   : > { %v283_v41 = vpop.permute.xlu2 %282 }
 0x300   : > { %v285_v42 = vadd.f32 %v283_v41, %v279_v40 }
 0x302   : > { %v286_v43 = vmax.f32 %v285_v42, 0.0 }
 0x304   : > { %v287_v44 = vadd.f32 %v286_v43, %v681_v1 }
 0x306   : > { %288 = vst [vmem:[%s175_s11] sm:$0xff] %v287_v44 }
 0x307 PF: > { %s297_s9 = smul.u32 %s552_s15, %s556_s16  ;;  %s303_s10 = sshll.u32 %s175_s11, 4  ;;  %s304_s10 = int_to_ptr.vmem [resolvable:$true] %s303_s10 }
 0x308   : > { %s290_s29 = scalar_lea.sflag [#allocation5], %s173_s4  ;;  %s494_s5 = scalar_lea.hbm %s748_s3, 16 }
 0x309   : > { %s387_s20 = sshll.u32 %s297_s9, 3 }
 0x30a   : > { %s301_s27 = scalar_lea.hbm %s748_s3, %s387_s20 }
 0x30b   : > { %s305_s28 = sshll.u32 %s301_s27, 4  ;;  %s306_s28 = int_to_ptr.hbm [resolvable:$true] %s305_s28 }
 0x30c   : > { %s488_s6 = sshra.s32 %s306_s28, 4  ;;  %s489_s6 = int_to_ptr.hbm [resolvable:$true] %s488_s6 }
 0x30d   : > { %s490_s7 = scalar_lea.hbm %s489_s6, 8  ;;  %p495_p9 = scmp.lt.s32.totalorder %s489_s6, %s748_s3 }
 0x30e   : > { %p491_p4 = scmp.ne.s32.totalorder %s489_s6, %s490_s7  ;;  %p496_p10 = scmp.lt.s32.totalorder %s494_s5, %s490_s7 }
 0x310   : > { %p492_p5 = pnand %p491_p4, %p650_p6  ;;  %p497_p11 = por %p496_p10, %p495_p9 }
 0x312   : > { %p493_p7 = pneg %p492_p5 }
 0x314   : > { %p498_p12 = pnand %p497_p11, %p493_p7 }
 0x316   : > { %501 = shalt.err (!%p498_p12)
}
 0x317   : > { %390 = dma.vmem_to_hbm [thread:$0]  (%p650_p6), %s304_s10, 128, %s306_s28, %s290_s29  }
 0x318 PF: > { %p396_p13 = scmp.ge.s32.totalorder %s568_s19, 2  ;;  %s317_s4 = sand.u32 1, %s540_s12  }
 0x319   : > { %s318_s9 = scalar_lea.sflag [#allocation5], %s317_s4 }
 0x31a   : > { %p393_p0 = pnand %p396_p13, %p657_p8 }
 0x31c   : > { %p394_p1 = pneg %p393_p0 }
 0x31e   : > { %535 = dma.done.wait (%p394_p1), %s318_s9, 128  }
 0x31f   : > { %537 = vsyncadd (%p394_p1), %s318_s9, 4294967168  ;;  %s16_s19 = sadd.s32 1, %s568_s19   ;;  %s751_s12 = smov %s544_s13 }
 0x320   : > { %p13_p2 = scmp.ge.s32.totalorder %s16_s19, 6   ;;  %s752_s13 = smov %s548_s14 }
 0x321   : > { %s753_s14 = smov %s666_s30  ;;  %s754_s15 = smov %s560_s17 }
 0x322   : > { %s755_s16 = smov %s564_s18  ;;  %s756_s17 = smov %s759_s22 }
 0x323   : > { %s757_s18 = smov %s763_s23  ;;  %15 = sbr.rel (!%p13_p2) target bundleno = 5 (0x5), region = 79 }
 0x328   :  { %324 = vsyncpa [#allocation5], 1 }
 0x329   :  { %326 = vsyncpa [#allocation5 + $0x1], 1 }

// kernel: transformer_block_forward.9
= control target key start
LH: loop header
LB: loop body
LE: loop exit
PB: predicated region body
PF: predicated region fallthrough
CT: control target
= control target key end

     0   :  { %s491_s12 = smov 0   ;;  %s493_s13 = smov 0   ;;  %s564_s0 = inlined_call_operand.vmem [shape: f32[2,8,128], index: 0, kind: input, shape index: {}]   ;;  %s565_s1 = inlined_call_operand.vmem [shape: f32[1,8,8], index: 1, kind: input, shape index: {}]   ;;  %s566_s2 = inlined_call_operand.vmem [shape: f32[8,3], index: 2, kind: input, shape index: {}]   ;;  %s567_s3 = inlined_call_operand.vmem [shape: f32[2,8,128], index: 3, kind: output, shape index: {}]  }
   0x1   :  { %s495_s14 = smov 0   ;;  %s497_s15 = smov 0  }
   0x2   :  { %s499_s16 = smov 0  }
   0x3 LB: > { %s22_s17 = sadd.s32 1, %s454_s14  ;;  %s25_s18 = sadd.s32 1, %s458_s15  ;;  %s462_s16 = sphi %s499_s16, %s13_s16   ;;  %s458_s15 = sphi %s497_s15, %s571_s15   ;;  %s454_s14 = sphi %s495_s14, %s570_s14   ;;  %s450_s13 = sphi %s493_s13, %s569_s13   ;;  %s446_s12 = sphi %s491_s12, %s568_s12  }
   0x4   : > { %p23_p0 = scmp.ge.s32.totalorder %s22_s17, 2  ;;  %p363_p1 = scmp.ge.s32.totalorder %s462_s16, 1 }
   0x5   : > { %p150_p2 = scmp.lt.s32.totalorder %s462_s16, 5 }
   0x6   : > { %s573_s17 = smov (%p23_p0, %s22_s17), 0  ;;  %s575_s18 = smov (!%p23_p0, %s25_s18), %s458_s15 }
   0x7   : > { %p151_p3 = pnand %p363_p1, %p150_p2  ;;  %p27_p4 = scmp.ge.s32.totalorder %s575_s18, 2 }
   0x8   : > { %p173_p5 = scmp.lt.s32.totalorder (!%p151_p3), %s446_s12, 1  ;;  %s177_s19 = smul.u32 (!%p151_p3), %s446_s12, %s450_s13 }
   0x9   : > { %s577_s18 = smov (%p27_p4, %s575_s18), 0  ;;  %154 = sbr.rel (%p151_p3) target bundleno = 767 (0x2ff), region = 32 }
   0xa   : > { %p183_p6 = scmp.eq.s32.totalorder (!%p151_p3), %s450_s13, 0  ;;  %p184_p7 = scmp.eq.s32.totalorder (!%p151_p3), %s446_s12, 0 }
   0xb   : > { %p178_p8 = scmp.lt.s32.totalorder (!%p151_p3), %s177_s19, 1 }
   0xc   : > { %p185_p9 = pnand (!%p151_p3), %p184_p7, %p183_p6 }
   0xe   : > { %s579_s12 = smov (!%p173_p5, %s446_s12), 1  ;;  %s581_s19 = smov (!%p178_p8, %s177_s19), 1 }
   0xf   : > { %s364_s20 = sshll.u32 %s579_s12, 3  ;;  %s365_s24 = sshll.u32 %s581_s19, 3 }
  0x10   : > { %s176_s23 = scalar_lea.vmem %s564_s0, %s364_s20  ;;  %s531_s27 = scalar_lea.vmem %s567_s3, %s365_s24 }
  0x11   : > { %188 = sbr.rel (%p185_p9) target bundleno = 25 (0x19), region = 36 }
  0x16   : > { %vm189_vm0 = vcmask 7168   ;;  %v464_v0 = vmov 0.0  }
  0x17   : > { %190 = vst.msk [vmem:[#allocation2] sm:$0xff] %vm189_vm0, %v464_v0 }
  0x18   : > { %191 = vst.msk [vmem:[#allocation3] sm:$0xff] %vm189_vm0, %v464_v0 }
  0x19 PF: > { %v533_v1 = vld [vmem:[%s176_s23] sm:$0xff]  ;;  %vm200_vm1 = vcmask 64512   ;;  %v465_v4 = vmov 0   ;;  %p367_p10 = scmp.ne.s32.totalorder %s450_s13, 0 }
  0x1a   : > { %v194_v2 = vld [vmem:[%s565_s1] sm:$0xff]  ;;  %219 = vmatpush.msra.mxu0 %v533_v1  ;;  %418 = vset.pattern.permute.xlu0 %v465_v4 }
  0x1b   : > { %v192_v3 = vld [vmem:[%s566_s2] sm:$0xff]  ;;  %366 = vmatmul.msk.f32.vlgmr.msra.gmra.mxu0 %vm200_vm1, %v194_v2 }
  0x1c   : > { %197 = vperm.xlu0 %418, %v192_v3  }
  0x8e   : > { %v198_v5 = vpop.permute.xlu0 %197 }
  0x95   : > { %226 = sbr.rel (%p367_p10) target bundleno = 282 (0x11a), region = 40 }
  0x98   : > { %v221_v6 = vpop.f32.mrf.mxu0 }
  0x99   : > { %v222_v7 = vadd.f32 %v221_v6, %v198_v5 }
  0x9a   : > { %v227_v9 = vld [vmem:[#allocation2] sm:$0xff]  ;;  %vm231_vm2 = vcmask 7168   ;;  %v233_v12 = vld [vmem:[#allocation3] sm:$0xff] }
  0x9b   : > { %228 = vadd.xlane.f32.xlu0 %v222_v7  ;;  %v234_v8 = vmul.f32 %v222_v7, %v222_v7 }
  0xa3   : > { %235 = vadd.xlane.f32.xlu0 %v234_v8 }
 0x10e   : > { %v229_v10 = vpop.xlane.xlu0 %228 }
 0x10f   : > { %v230_v11 = vadd.f32 %v229_v10, %v227_v9 }
 0x111   : > { %232 = vst.msk [vmem:[#allocation2] sm:$0xff] %vm231_vm2, %v230_v11 }
 0x116   : > { %v236_v13 = vpop.xlane.xlu0 %235 }
 0x117   : > { %v237_v14 = vadd.f32 %v236_v13, %v233_v12 }
 0x119   : > { %238 = vst.msk [vmem:[#allocation3] sm:$0xff] %vm231_vm2, %v237_v14 }
 0x11a PF: > { %p368_p11 = scmp.ne.s32.totalorder %s450_s13, 1 }
 0x11b   : > { %s466_s5 = smov (!%p368_p11), 1   ;;  %s467_s8 = smov (!%p368_p11), 127  }
 0x11c   : > { %242 = sbr.rel (%p368_p11) target bundleno = 767 (0x2ff), region = 44  ;;  %s469_s9 = smov (!%p368_p11), 2  }
 0x121   : > { %v243_v15 = vld [vmem:[#allocation2] sm:$0xff]  ;;  %v245_v16 = vld [vmem:[#allocation3] sm:$0xff]  ;;  %v468_v33 = vmov 1   ;;  %v470_v36 = vmov 2  }
 0x122   : > { %v244_v17 = vmul.f32 0.00390625, %v243_v15  ;;  %v246_v18 = vmul.f32 0.00390625, %v245_v16  ;;  %v250_v30 = vld [vmem:[%s566_s2] sm:$0xff]  ;;  %419 = vset.pattern.permute.xlu1 %v468_v33  ;;  %420 = vset.pattern.permute.xlu2 %v470_v36 }
 0x123   : > { %421 = vset.pattern.permute.xlu0 %v470_v36 }
 0x124   : > { %v247_v19 = vmul.f32 %v244_v17, %v244_v17 }
 0x126   : > { %v248_v20 = vsub.f32 %v246_v18, %v247_v19 }
 0x128   : > { %v249_v21 = vmax.f32 %v248_v20, 0.0 }
 0x12a   : > { %v251_v22 = vadd.f32 1e-05, %v249_v21 }
 0x12c   : > { %422 = vrsqrt.f32 %v251_v22  ;;  %vm258_vm3 = vweird.f32 %v251_v22 }
 0x132   : > { %v423_v23 = vpop.eup %422 }
 0x133   : > { %v253_v24 = vmul.f32 %v423_v23, %v251_v22  ;;  %vm259_vm4 = vweird.f32 %v423_v23 }
 0x134   : > { %vm260_vm5 = vmor %vm258_vm3, %vm259_vm4 }
 0x135   : > { %v254_v25 = vmul.f32 %v423_v23, %v253_v24 }
 0x137   : > { %v255_v26 = vmul.f32 0.5, %v254_v25 }
 0x139   : > { %v256_v27 = vsub.f32 1.5, %v255_v26 }
 0x13b   : > { %v257_v28 = vmul.f32 %v423_v23, %v256_v27 }
 0x13d   : > { %v261_v29 = vsel %vm260_vm5, %v423_v23, %v257_v28 }
 0x13e   : > { %263 = vrot.lane.b32.xlu0 %v261_v29, %s466_s5 }
 0x1b0   : > { %v264_v31 = vpop.permute.xlu0 %263 }
 0x1b1   : > { %v266_v32 = vmul.f32 %v264_v31, %v250_v30 }
 0x1b3   : > { %268 = vrot.lane.b32.xlu0 %v266_v32, %s467_s8 }
 0x225   : > { %v269_v34 = vpop.permute.xlu0 %268 }
 0x226   : > { %v271_v35 = vmul.f32 %v269_v34, %v244_v17 }
 0x228   : > { %273 = vrot.lane.b32.xlu1 %v271_v35, %s469_s9 }
 0x230   : > { %278 = vperm.xlu1 %419, %v266_v32  }
 0x29a   : > { %v274_v37 = vpop.permute.xlu1 %273 }
 0x29b   : > { %v276_v38 = vsub.f32 %v250_v30, %v274_v37 }
 0x29d   : > { %284 = vperm.xlu2 %420, %v276_v38  }
 0x2a2   : > { %v279_v39 = vpop.permute.xlu1 %278 }
 0x2a3   : > { %v281_v40 = vmul.f32 %v279_v39, %v222_v7 }
 0x2f7   : > { %v285_v41 = vpop.permute.xlu2 %284 }
 0x2f8   : > { %v287_v42 = vadd.f32 %v285_v41, %v281_v40 }
 0x2fa   : > { %v288_v43 = vmax.f32 %v287_v42, 0.0 }
 0x2fc   : > { %v289_v44 = vadd.f32 %v288_v43, %v533_v1 }
 0x2fe   : > { %290 = vst [vmem:[%s531_s27] sm:$0xff] %v289_v44 }
 0x2ff PF: > { %s13_s16 = sadd.s32 1, %s462_s16   ;;  %s568_s12 = smov %s454_s14 }
 0x300   : > { %p10_p12 = scmp.ge.s32.totalorder %s13_s16, 6   ;;  %s569_s13 = smov %s458_s15 }
 0x301   : > { %s570_s14 = smov %s573_s17  ;;  %s571_s15 = smov %s577_s18 }
 0x302   :  { %12 = sbr.rel (!%p10_p12) target bundleno = 3 (0x3), region = 74 }

// kernel: transformer_block_forward.10
= control target key start
LH: loop header
LB: loop body
LE: loop exit
PB: predicated region body
PF: predicated region fallthrough
CT: control target
= control target key end

     0   :  { %s850_s18 = smov 0   ;;  %s1127_s0 = inlined_call_operand.vmem [shape: f32[2,8,128], index: 0, kind: input, shape index: {}]   ;;  %s1128_s1 = inlined_call_operand.vmem [shape: f32[128,384], index: 1, kind: input, shape index: {}]   ;;  %s1129_s2 = inlined_call_operand.vmem [shape: f32[1,384], index: 2, kind: input, shape index: {}]   ;;  %s1130_s3 = inlined_call_operand.vmem [shape: f32[128,128], index: 3, kind: input, shape index: {}]   ;;  %s1131_s4 = inlined_call_operand.vmem [shape: f32[1,128], index: 4, kind: input, shape index: {}]   ;;  %s1132_s5 = inlined_call_operand.vmem [shape: f32[2,8,128], index: 5, kind: output, shape index: {}]  }
   0x1 LB: > { %s760_s19 = sadd.s32 4294967295, %s815_s18   ;;  %p764_p0 = scmp.ge.s32.totalorder %s815_s18, 1  ;;  %s815_s18 = sphi %s850_s18, %s15_s18  }
   0x2   : > { %p186_p1 = scmp.lt.s32.totalorder %s815_s18, 3 }
   0x4   : > { %p187_p2 = pnand %p764_p0, %p186_p1 }
   0x5   : > { %p212_p3 = scmp.lt.s32.totalorder (!%p187_p2), %s760_s19, 1  ;;  %s817_s6 = smov (!%p187_p2), 96  }
   0x6   : > { %190 = sbr.rel (%p187_p2) target bundleno = 1475 (0x5c3), region = 40  ;;  %s818_s7 = smov (!%p187_p2), 64  }
   0x7   : > { %s819_s8 = smov (!%p187_p2), 32  }
   0xb   : > { %v267_v0 = vld [vmem:[%s1128_s1 + $0x170] sm:$0xff]  ;;  %v268_v1 = vld [vmem:[%s1128_s1 + $0x178] sm:$0xff]  ;;  %v266_v2 = vld [vmem:[%s1128_s1 + $0x168] sm:$0xff]  ;;  %s1134_s19 = smov (!%p212_p3, %s760_s19), 1  ;;  %vm338_vm0 = vcmask 261120   ;;  %vm365_vm1 = vcmask 64512  }
   0xc   : > { %297 = vmatpush.msra.mxu1 %v267_v0  ;;  %317 = vmatpush.msra.mxu2 %v268_v1  ;;  %v264_v3 = vld [vmem:[%s1128_s1 + $0x158] sm:$0xff]  ;;  %v265_v4 = vld [vmem:[%s1128_s1 + $0x160] sm:$0xff]  ;;  %v263_v5 = vld [vmem:[%s1128_s1 + $0x150] sm:$0xff]  ;;  %s765_s29 = sshll.u32 %s1134_s19, 3 }
   0xd   : > { %277 = vmatpush.msra.mxu0 %v266_v2  ;;  %v261_v6 = vld [vmem:[%s1128_s1 + $0x140] sm:$0xff]  ;;  %v262_v7 = vld [vmem:[%s1128_s1 + $0x148] sm:$0xff]  ;;  %v260_v8 = vld [vmem:[%s1128_s1 + $0x138] sm:$0xff]  ;;  %s215_s17 = scalar_lea.vmem %s1127_s0, %s765_s29  ;;  %s219_s25 = scalar_lea.vmem %s1132_s5, %s765_s29 }
   0xe   : > { %298 = vmatpush.msra.mxu1 %v264_v3  ;;  %318 = vmatpush.msra.mxu2 %v265_v4  ;;  %v258_v9 = vld [vmem:[%s1128_s1 + $0x128] sm:$0xff]  ;;  %v259_v10 = vld [vmem:[%s1128_s1 + $0x130] sm:$0xff]  ;;  %v257_v11 = vld [vmem:[%s1128_s1 + $0x120] sm:$0xff] }
   0xf   : > { %278 = vmatpush.msra.mxu0 %v263_v5  ;;  %v255_v12 = vld [vmem:[%s1128_s1 + $0x110] sm:$0xff]  ;;  %v256_v13 = vld [vmem:[%s1128_s1 + $0x118] sm:$0xff]  ;;  %v254_v14 = vld [vmem:[%s1128_s1 + $0x108] sm:$0xff] }
  0x10   : > { %299 = vmatpush.msra.mxu1 %v261_v6  ;;  %319 = vmatpush.msra.mxu2 %v262_v7  ;;  %v252_v15 = vld [vmem:[%s1128_s1 + $0xf8] sm:$0xff]  ;;  %v253_v16 = vld [vmem:[%s1128_s1 + $0x100] sm:$0xff]  ;;  %v251_v17 = vld [vmem:[%s1128_s1 + $0xf0] sm:$0xff] }
  0x11   : > { %279 = vmatpush.msra.mxu0 %v260_v8  ;;  %v249_v18 = vld [vmem:[%s1128_s1 + $0xe0] sm:$0xff]  ;;  %v250_v19 = vld [vmem:[%s1128_s1 + $0xe8] sm:$0xff]  ;;  %v248_v20 = vld [vmem:[%s1128_s1 + $0xd8] sm:$0xff] }
  0x12   : > { %300 = vmatpush.msra.mxu1 %v258_v9  ;;  %320 = vmatpush.msra.mxu2 %v259_v10  ;;  %v246_v21 = vld [vmem:[%s1128_s1 + $0xc8] sm:$0xff]  ;;  %v247_v22 = vld [vmem:[%s1128_s1 + $0xd0] sm:$0xff]  ;;  %v245_v23 = vld [vmem:[%s1128_s1 + $0xc0] sm:$0xff] }
  0x13   : > { %280 = vmatpush.msra.mxu0 %v257_v11  ;;  %v243_v24 = vld [vmem:[%s1128_s1 + $0xb0] sm:$0xff]  ;;  %v244_v25 = vld [vmem:[%s1128_s1 + $0xb8] sm:$0xff]  ;;  %v242_v26 = vld [vmem:[%s1128_s1 + $0xa8] sm:$0xff] }
  0x14   : > { %301 = vmatpush.msra.mxu1 %v255_v12  ;;  %321 = vmatpush.msra.mxu2 %v256_v13  ;;  %v240_v27 = vld [vmem:[%s1128_s1 + $0x98] sm:$0xff]  ;;  %v241_v28 = vld [vmem:[%s1128_s1 + $0xa0] sm:$0xff]  ;;  %v239_v29 = vld [vmem:[%s1128_s1 + $0x90] sm:$0xff] }
  0x15   : > { %281 = vmatpush.msra.mxu0 %v254_v14  ;;  %v237_v30 = vld [vmem:[%s1128_s1 + $0x80] sm:$0xff]  ;;  %v238_v31 = vld [vmem:[%s1128_s1 + $0x88] sm:$0xff]  ;;  %v236_v32 = vld [vmem:[%s1128_s1 + $0x78] sm:$0xff] }
  0x16   : > { %302 = vmatpush.msra.mxu1 %v252_v15  ;;  %322 = vmatpush.msra.mxu2 %v253_v16  ;;  %v234_v33 = vld [vmem:[%s1128_s1 + $0x68] sm:$0xff]  ;;  %v235_v34 = vld [vmem:[%s1128_s1 + $0x70] sm:$0xff]  ;;  %v233_v35 = vld [vmem:[%s1128_s1 + $0x60] sm:$0xff] }
  0x17   : > { %282 = vmatpush.msra.mxu0 %v251_v17  ;;  %v231_v36 = vld [vmem:[%s1128_s1 + $0x50] sm:$0xff]  ;;  %v232_v37 = vld [vmem:[%s1128_s1 + $0x58] sm:$0xff]  ;;  %v230_v38 = vld [vmem:[%s1128_s1 + $0x48] sm:$0xff] }
  0x18   : > { %303 = vmatpush.msra.mxu1 %v249_v18  ;;  %323 = vmatpush.msra.mxu2 %v250_v19  ;;  %v228_v39 = vld [vmem:[%s1128_s1 + $0x38] sm:$0xff]  ;;  %v229_v40 = vld [vmem:[%s1128_s1 + $0x40] sm:$0xff]  ;;  %v227_v41 = vld [vmem:[%s1128_s1 + $0x30] sm:$0xff] }
  0x19   : > { %283 = vmatpush.msra.mxu0 %v248_v20  ;;  %v225_v42 = vld [vmem:[%s1128_s1 + $0x20] sm:$0xff]  ;;  %v226_v43 = vld [vmem:[%s1128_s1 + $0x28] sm:$0xff]  ;;  %v224_v44 = vld [vmem:[%s1128_s1 + $0x18] sm:$0xff] }
  0x1a   : > { %304 = vmatpush.msra.mxu1 %v246_v21  ;;  %324 = vmatpush.msra.mxu2 %v247_v22  ;;  %v222_v45 = vld [vmem:[%s1128_s1 + $0x8] sm:$0xff]  ;;  %v223_v46 = vld [vmem:[%s1128_s1 + $0x10] sm:$0xff]  ;;  %v221_v47 = vld [vmem:[%s1128_s1] sm:$0xff] }
  0x1b   : > { %284 = vmatpush.msra.mxu0 %v245_v23  ;;  %v1014_v48 = vld [vmem:[%s215_s17] sm:$0xff] }
  0x1c   : > { %305 = vmatpush.msra.mxu1 %v243_v24  ;;  %325 = vmatpush.msra.mxu2 %v244_v25  ;;  %v269_v49 = vld [vmem:[%s1129_s2] sm:$0x7] }
  0x1d   : > { %285 = vmatpush.msra.mxu0 %v242_v26  ;;  %v272_v50 = vperm.slane %v269_v49, 1  ;;  %v271_v51 = vperm.slane %v269_v49, 0  ;;  %v273_v57 = vperm.slane %v269_v49, 2 }
  0x1e   : > { %306 = vmatpush.msra.mxu1 %v240_v27  ;;  %326 = vmatpush.msra.mxu2 %v241_v28 }
  0x1f   : > { %286 = vmatpush.msra.mxu0 %v239_v29 }
  0x20   : > { %307 = vmatpush.msra.mxu1 %v237_v30  ;;  %327 = vmatpush.msra.mxu2 %v238_v31 }
  0x21   : > { %287 = vmatpush.msra.mxu0 %v236_v32 }
  0x22   : > { %308 = vmatpush.msra.mxu1 %v234_v33  ;;  %328 = vmatpush.msra.mxu2 %v235_v34 }
  0x23   : > { %288 = vmatpush.msra.mxu0 %v233_v35 }
  0x24   : > { %309 = vmatpush.msra.mxu1 %v231_v36  ;;  %329 = vmatpush.msra.mxu2 %v232_v37 }
  0x25   : > { %289 = vmatpush.msra.mxu0 %v230_v38 }
  0x26   : > { %310 = vmatpush.msra.mxu1 %v228_v39  ;;  %330 = vmatpush.msra.mxu2 %v229_v40 }
  0x27   : > { %290 = vmatpush.msra.mxu0 %v227_v41 }
  0x28   : > { %311 = vmatpush.msra.mxu1 %v225_v42  ;;  %331 = vmatpush.msra.mxu2 %v226_v43 }
  0x29   : > { %291 = vmatpush.msra.mxu0 %v224_v44 }
  0x2a   : > { %312 = vmatpush.msra.mxu1 %v222_v45  ;;  %332 = vmatpush.msra.mxu2 %v223_v46 }
  0x2b   : > { %292 = vmatpush.msra.mxu0 %v221_v47  ;;  %313 = vmatmul.f32.vlgmr.msra.gmra.mxu1 %v1014_v48 }
  0x2c   : > { %333 = vmatmul.f32.vlgmr.msra.gmra.mxu2 %v1014_v48  ;;  %293 = vmatmul.f32.vlgmr.msra.gmra.mxu0 %v1014_v48 }
  0xa8   : > { %v314_v52 = vpop.f32.mrf.mxu1 }
  0xa9   : > { %v315_v53 = vadd.f32 %v314_v52, %v272_v50  ;;  %v294_v54 = vpop.f32.mrf.mxu0 }
  0xaa   : > { %v295_v55 = vadd.f32 %v294_v54, %v271_v51 }
  0xab   : > { %415 = vrot.lane.b32.xlu0 %v315_v53, %s817_s6  ;;  %767 = vmatpush.xpose.msk.msrb.mxu0 %vm338_vm0, %v315_v53 }
  0xac   : > { %v1024_v56 = vmul.f32 0.17677669, %v295_v55 }
  0xae   : > { %768 = vmatmul.msk.f32.vlgmr.msrb.gmra.mxu0 %vm338_vm0, %v1024_v56 }
  0xaf   : > { %v334_v58 = vpop.f32.mrf.mxu2 }
  0xb0   : > { %v1028_v59 = vadd.f32 %v334_v58, %v273_v57 }
  0xb2   : > { %466 = vrot.lane.b32.xlu2 %v1028_v59, %s817_s6  ;;  %408 = vmatpush.msrb.mxu2 %v1028_v59 }
  0xb3   : > { %413 = vrot.lane.b32.xlu0 %v1024_v56, %s817_s6 }
  0xba   : > { %494 = vrot.lane.b32.xlu2 %v315_v53, %s818_s7 }
  0xbb   : > { %572 = vrot.lane.b32.xlu0 %v315_v53, %s819_s8 }
  0xc2   : > { %570 = vrot.lane.b32.xlu2 %v1024_v56, %s819_s8 }
 0x10c   : > { %v467_v60 = vpop.permute.xlu2 %466 }
 0x10d   : > { %487 = vmatpush.msra.mxu3 %v467_v60 }
 0x114   : > { %v495_v61 = vpop.permute.xlu2 %494 }
 0x115   : > { %773 = vmatpush.xpose.msk.msrb.mxu3 %vm338_vm0, %v495_v61 }
 0x11c   : > { %v571_v3 = vpop.permute.xlu2 %570 }
 0x11d   : > { %v416_v62 = vpop.permute.xlu0 %415 }
 0x11e   : > { %770 = vmatpush.xpose.msk.msrb.mxu1 %vm338_vm0, %v416_v62 }
 0x125   : > { %v414_v63 = vpop.permute.xlu0 %413 }
 0x126   : > { %771 = vmatmul.msk.f32.vlgmr.msrb.gmra.mxu1 %vm338_vm0, %v414_v63 }
 0x12b   : > { %v362_v0 = vpop.f32.mrf.mxu0 }
 0x12c   : > { %v366_v1 = vsel %vm365_vm1, %v362_v0, -inf }
 0x12d   : > { %v573_v2 = vpop.permute.xlu0 %572  ;;  %367 = vmax.xlane.f32.xlu0 %v366_v1 }
 0x12e   : > { %776 = vmatpush.xpose.msk.msra.mxu1 %vm338_vm0, %v573_v2 }
 0x131   : > { %777 = vmatmul.msk.f32.vlgmr.msra.gmra.mxu1 %vm338_vm0, %v571_v3 }
 0x1a0   : > { %v368_v4 = vpop.xlane.xlu0 %367 }
 0x1a1   : > { %v369_v7 = vsub.f32 %v362_v0, %v368_v4 }
 0x1a3   : > { %v438_v5 = vpop.f32.mrf.mxu1  ;;  %v370_v8 = vmul.f32 1.442695, %v369_v7 }
 0x1a4   : > { %v441_v6 = vsel %vm365_vm1, %v438_v5, -inf }
 0x1a5   : > { %442 = vmax.xlane.f32.xlu1 %v441_v6  ;;  %793 = vpow2.f32 %v370_v8 }
 0x1ab   : > { %v794_v11 = vpop.eup %793 }
 0x1ac   : > { %v372_v12 = vsel %vm365_vm1, %v794_v11, 0.0 }
 0x1ae   : > { %v595_v9 = vpop.f32.mrf.mxu1 }
 0x1af   : > { %v598_v10 = vsel %vm365_vm1, %v595_v9, -inf }
 0x1b0   : > { %599 = vmax.xlane.f32.xlu2 %v598_v10 }
 0x1b8   : > { %373 = vadd.xlane.f32.xlu2 %v372_v12 }
 0x218   : > { %v443_v13 = vpop.xlane.xlu1 %442 }
 0x219   : > { %v444_v14 = vsub.f32 %v438_v5, %v443_v13 }
 0x21b   : > { %v445_v15 = vmul.f32 1.442695, %v444_v14 }
 0x21d   : > { %795 = vpow2.f32 %v445_v15 }
 0x223   : > { %v796_v16 = vpop.eup %795  ;;  %v600_v17 = vpop.xlane.xlu2 %599 }
 0x224   : > { %v601_v18 = vsub.f32 %v595_v9, %v600_v17  ;;  %v447_v19 = vsel %vm365_vm1, %v796_v16, 0.0 }
 0x225   : > { %448 = vadd.xlane.f32.xlu1 %v447_v19 }
 0x226   : > { %v602_v20 = vmul.f32 1.442695, %v601_v18 }
 0x228   : > { %797 = vpow2.f32 %v602_v20  ;;  %v679_v20 = vld [vmem:[%s1130_s3 + $0x70] sm:$0xff] }
 0x22b   : > { %v374_v21 = vpop.xlane.xlu2 %373 }
 0x22c   : > { %799 = vrcp.f32 %v374_v21  ;;  %v386_v27 = vand.u32 2147483648, %v374_v21  ;;  %v384_v29 = vand.u32 2147483647, %v374_v21  ;;  %vm380_vm3 = vweird.f32 %v374_v21 }
 0x22e   : > { %v798_v22 = vpop.eup %797  ;;  %v387_v31 = vor.u32 1.1754944e-38, %v386_v27  ;;  %vm385_vm5 = vcmp.eq.f32.partialorder %v384_v29, 8.507059e+37  ;;  %v672_v27 = vld [vmem:[%s1130_s3 + $0x38] sm:$0xff]  ;;  %v670_v29 = vld [vmem:[%s1130_s3 + $0x28] sm:$0xff] }
 0x22f   : > { %v604_v23 = vsel %vm365_vm1, %v798_v22, 0.0 }
 0x230   : > { %605 = vadd.xlane.f32.xlu0 %v604_v23  ;;  %v676_v23 = vld [vmem:[%s1130_s3 + $0x58] sm:$0xff] }
 0x232   : > { %v800_v24 = vpop.eup %799 }
 0x233   : > { %v376_v25 = vmul.f32 %v800_v24, %v374_v21  ;;  %vm381_vm2 = vweird.f32 %v800_v24  ;;  %v678_v21 = vld [vmem:[%s1130_s3 + $0x68] sm:$0xff] }
 0x234   : > { %vm382_vm4 = vmor %vm380_vm3, %vm381_vm2 }
 0x235   : > { %v377_v26 = vsub.f32 1.0, %v376_v25  ;;  %v674_v25 = vld [vmem:[%s1130_s3 + $0x48] sm:$0xff] }
 0x237   : > { %v378_v28 = vmul.f32 %v800_v24, %v377_v26  ;;  %v673_v26 = vld [vmem:[%s1130_s3 + $0x40] sm:$0xff] }
 0x239   : > { %v379_v30 = vadd.f32 %v800_v24, %v378_v28  ;;  %v671_v28 = vld [vmem:[%s1130_s3 + $0x30] sm:$0xff] }
 0x23b   : > { %v383_v32 = vsel %vm382_vm4, %v800_v24, %v379_v30  ;;  %v675_v24 = vld [vmem:[%s1130_s3 + $0x50] sm:$0xff]  ;;  %vm663_vm4 = vcmask 785408  }
 0x23c   : > { %v388_v33 = vsel %vm385_vm5, %v387_v31, %v383_v32 }
 0x23d   : > { %v389_v34 = vmul.f32 %v794_v11, %v388_v33  ;;  %v669_v33 = vld [vmem:[%s1130_s3 + $0x20] sm:$0xff] }
 0x23e   : > { %492 = vrot.lane.b32.xlu1 %v1024_v56, %s818_s7 }
 0x23f   : > { %769 = vmatmul.msk.f32.vlgmr.msrb.gmra.mxu2 %vm365_vm1, %v389_v34  ;;  %v668_v34 = vld [vmem:[%s1130_s3 + $0x18] sm:$0xff] }
 0x244   : > { %622 = vrot.lane.b32.xlu0 %v1028_v59, %s819_s8 }
 0x298   : > { %v449_v35 = vpop.xlane.xlu1 %448 }
 0x299   : > { %801 = vrcp.f32 %v449_v35  ;;  %v461_v39 = vand.u32 2147483648, %v449_v35  ;;  %v459_v42 = vand.u32 2147483647, %v449_v35  ;;  %vm455_vm7 = vweird.f32 %v449_v35 }
 0x29b   : > { %v462_v44 = vor.u32 1.1754944e-38, %v461_v39  ;;  %vm460_vm9 = vcmp.eq.f32.partialorder %v459_v42, 8.507059e+37 }
 0x29f   : > { %v802_v36 = vpop.eup %801 }
 0x2a0   : > { %v451_v37 = vmul.f32 %v802_v36, %v449_v35  ;;  %vm456_vm6 = vweird.f32 %v802_v36  ;;  %v667_v35 = vld [vmem:[%s1130_s3 + $0x10] sm:$0xff] }
 0x2a1   : > { %vm457_vm8 = vmor %vm455_vm7, %vm456_vm6 }
 0x2a2   : > { %v452_v38 = vsub.f32 1.0, %v451_v37  ;;  %v665_v37 = vld [vmem:[%s1130_s3] sm:$0xff] }
 0x2a3   : > { %v606_v40 = vpop.xlane.xlu0 %605 }
 0x2a4   : > { %v453_v41 = vmul.f32 %v802_v36, %v452_v38  ;;  %803 = vrcp.f32 %v606_v40  ;;  %v618_v52 = vand.u32 2147483648, %v606_v40  ;;  %v616_v54 = vand.u32 2147483647, %v606_v40 }
 0x2a5   : > { %vm612_vm11 = vweird.f32 %v606_v40 }
 0x2a6   : > { %v454_v43 = vadd.f32 %v802_v36, %v453_v41  ;;  %v619_v56 = vor.u32 1.1754944e-38, %v618_v52  ;;  %vm617_vm13 = vcmp.eq.f32.partialorder %v616_v54, 8.507059e+37 }
 0x2a8   : > { %v458_v45 = vsel %vm457_vm8, %v802_v36, %v454_v43  ;;  %v666_v36 = vld [vmem:[%s1130_s3 + $0x8] sm:$0xff] }
 0x2a9   : > { %v463_v46 = vsel %vm460_vm9, %v462_v44, %v458_v45  ;;  %v792_v44 = vld [vmem:[%s1131_s4] ss:$0 sm:$0xff] }
 0x2aa   : > { %v804_v47 = vpop.eup %803  ;;  %v464_v49 = vmul.f32 %v796_v16, %v463_v46 }
 0x2ab   : > { %v608_v50 = vmul.f32 %v804_v47, %v606_v40  ;;  %vm613_vm10 = vweird.f32 %v804_v47 }
 0x2ac   : > { %772 = vmatmul.msk.f32.vlgmr.msra.gmra.mxu3 %vm365_vm1, %v464_v49  ;;  %vm614_vm12 = vmor %vm612_vm11, %vm613_vm10 }
 0x2ad   : > { %v609_v51 = vsub.f32 1.0, %v608_v50 }
 0x2af   : > { %v610_v53 = vmul.f32 %v804_v47, %v609_v51 }
 0x2b0   : > { %v493_v58 = vpop.permute.xlu1 %492 }
 0x2b1   : > { %v611_v55 = vadd.f32 %v804_v47, %v610_v53 }
 0x2b3   : > { %v615_v57 = vsel %vm614_vm12, %v804_v47, %v611_v55 }
 0x2b4   : > { %v620_v60 = vsel %vm617_vm13, %v619_v56, %v615_v57  ;;  %774 = vmatmul.msk.f32.vlgmr.msrb.gmra.mxu3 %vm338_vm0, %v493_v58 }
 0x2b5   : > { %v621_v61 = vmul.f32 %v798_v22, %v620_v60  ;;  %v677_v22 = vld [vmem:[%s1130_s3 + $0x60] sm:$0xff] }
 0x2b6   : > { %v623_v62 = vpop.permute.xlu0 %622 }
 0x2b7   : > { %643 = vmatpush.msra.mxu2 %v623_v62 }
 0x2b8   : > { %778 = vmatmul.msk.f32.vlgmr.msra.gmra.mxu2 %vm365_vm1, %v621_v61 }
 0x2c2   : > { %v410_v30 = vpop.f32.mrf.mxu2 }
 0x32f   : > { %v489_v63 = vpop.f32.mrf.mxu3 }
 0x337   : > { %v517_v0 = vpop.f32.mrf.mxu3 }
 0x338   : > { %v520_v1 = vsel %vm365_vm1, %v517_v0, -inf }
 0x339   : > { %521 = vmax.xlane.f32.xlu1 %v520_v1 }
 0x33b   : > { %v645_v32 = vpop.f32.mrf.mxu2 }
 0x352   : > { %649 = vrot.lane.b32.xlu1 %v489_v63, %s819_s8 }
 0x3ac   : > { %v522_v2 = vpop.xlane.xlu1 %521 }
 0x3ad   : > { %v523_v3 = vsub.f32 %v517_v0, %v522_v2 }
 0x3af   : > { %v524_v4 = vmul.f32 1.442695, %v523_v3 }
 0x3b1   : > { %805 = vpow2.f32 %v524_v4 }
 0x3b7   : > { %v806_v5 = vpop.eup %805 }
 0x3b8   : > { %v526_v6 = vsel %vm365_vm1, %v806_v5, 0.0 }
 0x3b9   : > { %527 = vadd.xlane.f32.xlu2 %v526_v6 }
 0x3c4   : > { %v650_v39 = vpop.permute.xlu1 %649 }
 0x3c5   : > { %v660_v40 = vsel %vm338_vm0, %v410_v30, %v650_v39 }
 0x3d1   : > { %544 = vrot.lane.b32.xlu2 %v1028_v59, %s818_s7  ;;  %v680_v59 = vld [vmem:[%s1130_s3 + $0x78] sm:$0xff] }
 0x3d2   : > { %685 = vmatpush.msra.mxu3 %v680_v59 }
 0x3d4   : > { %686 = vmatpush.msra.mxu3 %v679_v20 }
 0x3d6   : > { %687 = vmatpush.msra.mxu3 %v678_v21 }
 0x3d8   : > { %688 = vmatpush.msra.mxu3 %v677_v22 }
 0x3da   : > { %689 = vmatpush.msra.mxu3 %v676_v23 }
 0x3dc   : > { %690 = vmatpush.msra.mxu3 %v675_v24 }
 0x3de   : > { %691 = vmatpush.msra.mxu3 %v674_v25 }
 0x3e0   : > { %692 = vmatpush.msra.mxu3 %v673_v26 }
 0x3e2   : > { %693 = vmatpush.msra.mxu3 %v672_v27 }
 0x3e4   : > { %694 = vmatpush.msra.mxu3 %v671_v28 }
 0x3e6   : > { %695 = vmatpush.msra.mxu3 %v670_v29 }
 0x3e8   : > { %696 = vmatpush.msra.mxu3 %v669_v33 }
 0x3ea   : > { %697 = vmatpush.msra.mxu3 %v668_v34 }
 0x3ec   : > { %698 = vmatpush.msra.mxu3 %v667_v35 }
 0x3ee   : > { %699 = vmatpush.msra.mxu3 %v666_v36 }
 0x3f0   : > { %700 = vmatpush.msra.mxu3 %v665_v37 }
 0x42c   : > { %v528_v7 = vpop.xlane.xlu2 %527 }
 0x42d   : > { %807 = vrcp.f32 %v528_v7  ;;  %v540_v12 = vand.u32 2147483648, %v528_v7  ;;  %v538_v14 = vand.u32 2147483647, %v528_v7  ;;  %vm534_vm15 = vweird.f32 %v528_v7 }
 0x42f   : > { %v541_v16 = vor.u32 1.1754944e-38, %v540_v12  ;;  %vm539_vm3 = vcmp.eq.f32.partialorder %v538_v14, 8.507059e+37 }
 0x433   : > { %v808_v8 = vpop.eup %807 }
 0x434   : > { %v530_v9 = vmul.f32 %v808_v8, %v528_v7  ;;  %v545_v10 = vpop.permute.xlu2 %544  ;;  %vm535_vm14 = vweird.f32 %v808_v8 }
 0x435   : > { %565 = vmatpush.msra.mxu0 %v545_v10  ;;  %vm536_vm2 = vmor %vm534_vm15, %vm535_vm14 }
 0x436   : > { %v531_v11 = vsub.f32 1.0, %v530_v9 }
 0x438   : > { %v532_v13 = vmul.f32 %v808_v8, %v531_v11 }
 0x43a   : > { %v533_v15 = vadd.f32 %v808_v8, %v532_v13 }
 0x43c   : > { %v537_v17 = vsel %vm536_vm2, %v808_v8, %v533_v15 }
 0x43d   : > { %v542_v18 = vsel %vm539_vm3, %v541_v16, %v537_v17 }
 0x43e   : > { %v543_v19 = vmul.f32 %v806_v5, %v542_v18 }
 0x440   : > { %775 = vmatmul.msk.f32.vlgmr.msra.gmra.mxu0 %vm365_vm1, %v543_v19  ;;  %vm661_vm1 = vcmask 523264  }
 0x4bd   : > { %v567_v31 = vpop.f32.mrf.mxu0 }
 0x4be   : > { %653 = vrot.lane.b32.xlu0 %v567_v31, %s818_s7 }
 0x4c6   : > { %657 = vrot.lane.b32.xlu0 %v645_v32, %s817_s6 }
 0x530   : > { %v654_v38 = vpop.permute.xlu0 %653 }
 0x531   : > { %v662_v41 = vsel %vm661_vm1, %v660_v40, %v654_v38 }
 0x538   : > { %v658_v42 = vpop.permute.xlu0 %657 }
 0x539   : > { %v664_v43 = vsel %vm663_vm4, %v662_v41, %v658_v42 }
 0x53a   : > { %701 = vmatmul.f32.vlgmr.msra.gmra.mxu3 %v664_v43 }
 0x5bd   : > { %v702_v45 = vpop.f32.mrf.mxu3 }
 0x5be   : > { %v703_v46 = vadd.f32 %v792_v44, %v702_v45 }
 0x5c0   : > { %v705_v47 = vadd.f32 %v703_v46, %v1014_v48 }
 0x5c2   : > { %706 = vst [vmem:[%s219_s25] sm:$0xff] %v705_v47 }
 0x5c3 PF: > { %s15_s18 = sadd.s32 1, %s815_s18  }
 0x5c4   : > { %p12_p4 = scmp.ge.s32.totalorder %s15_s18, 4  }
 0x5c6   :  { %14 = sbr.rel (!%p12_p4) target bundleno = 1 (0x1), region = 70 }

</bundles_post_ra>
